<compile_context>
chip_gen: v7x
topology: tpu7x:2x2x1
jax: 0.10.0
libtpu: 0.0.40
codegen_flags: <defaults>
</compile_context>

<pallas_src>
import jax
import jax.numpy as jnp
from jax import lax
from jax.experimental import pallas as pl
from jax.experimental.pallas import tpu as pltpu


def _conv3x3_prelu_kernel(x_ref, w_ref, b_ref, a_ref, o_ref):
    """One (batch, row-tile) grid step.

    x_ref: (1, H+2, W+2, Cin) bf16  zero-padded NHWC image (h-invariant block)
    w_ref: (Cout, 9*Cin)      bf16  weights, columns ordered (ky, kx, cin)
    b_ref: (Cout, 1)          f32   bias
    a_ref: (1, 1)             f32   PReLU slope (SMEM scalar)
    o_ref: (1, Cout, TH*W)    bf16  conv+bias+PReLU for output rows
                                    [h*TH, h*TH+TH), flattened h_local*W + w
    """
    h = pl.program_id(1)
    _, cout, thw = o_ref.shape
    wp, cin = x_ref.shape[2], x_ref.shape[3]
    w_dim = wp - 2
    th = thw // w_dim

    row0 = h * th
    if th % 8 == 0:                       # sublane-aligned dynamic row offset
        row0 = pl.multiple_of(row0, 8)
    xp = x_ref[0, pl.ds(row0, th + 2), :, :]          # (TH+2, W+2, Cin) bf16

    # Per-tap accumulation: nine small-K MXU matmuls with f32 accumulation.
    # (Replaces the minor-axis im2col concatenate; MXU has slack, VPU/XLU don't.)
    acc = None
    for ky in range(3):
        for kx in range(3):
            t = ky * 3 + kx
            patch = xp[ky:ky + th, kx:kx + w_dim, :].reshape(th * w_dim, cin)
            part = lax.dot_general(
                w_ref[:, t * cin:(t + 1) * cin], patch,
                dimension_numbers=(((1,), (1,)), ((), ())),
                preferred_element_type=jnp.float32)       # (Cout, TH*W)
            acc = part if acc is None else acc + part

    acc = acc + b_ref[...]                 # bias, f32
    a = a_ref[0, 0]                        # single shared PReLU slope
    y = jnp.where(acc > 0, acc, a * acc)

    # Lane-dense bf16 store (TH*W is a multiple of 128 whenever possible).
    o_ref[...] = y.reshape(1, cout, thw).astype(o_ref.dtype)


def _vmem_step_bytes(th, W, Cin, Cout):
    """Per-grid-step VMEM footprint estimate (bytes) for a TH-row tile."""
    lanes = th * W
    wp = W + 2
    return (2 * Cout * lanes * 2        # bf16 output block, double-buffered
            + Cout * lanes * 4          # f32 accumulator value
            + (th + 2) * wp * Cin * 2   # loaded halo slab (bf16)
            + 2 * lanes * Cin * 2)      # per-tap patch temp + relayout slack


def _choose_tile_rows(H, W, Cin, Cout, vmem_budget):
    """Largest TH | H that fits the VMEM budget; TH 8-aligned (or TH==H) and
    TH*W a multiple of 128 when such a candidate exists."""
    hp, wp = H + 2, W + 2
    fixed = 2 * hp * wp * Cin * 2       # resident padded image, double-buffered
    cands = [th for th in range(1, H + 1)
             if H % th == 0
             and (th % 8 == 0 or th == H)
             and fixed + _vmem_step_bytes(th, W, Cin, Cout) <= vmem_budget]
    if not cands:
        # Can't do better without halo row tiling (see TODO at top).
        return H
    dense = [th for th in cands if (th * W) % 128 == 0]
    pool = dense if dense else cands
    return max(pool)


def upsample_block_forward(x_nchw, w_hwio, bias, alpha, up_scale,
                           out_dtype=jnp.float32):
    """x_nchw: (N, Cin, H, W) float32.  Returns (N, Cin, H*r, W*r) out_dtype.

    Set out_dtype=jnp.bfloat16 for inference pipelines that tolerate bf16
    end-to-end (saves the final upcast write)."""
    N, Cin, H, W = x_nchw.shape
    r = int(up_scale)
    Cout = Cin * r * r
    assert w_hwio.shape == (3, 3, Cin, Cout)

    # Conservative budget so the chosen tiling also fits v7x (64 MiB physical).
    vmem_budget = 48 * 1024 * 1024
    TH = _choose_tile_rows(H, W, Cin, Cout, vmem_budget)
    nH = H // TH

    # Input prep (one fused XLA pass over the *small* input tensor):
    # NCHW -> NHWC, zero-pad the 3x3 halo, cast to bf16.
    x_nhwc = jnp.transpose(x_nchw, (0, 2, 3, 1))
    x_pad = jnp.pad(x_nhwc, ((0, 0), (1, 1), (1, 1), (0, 0))).astype(jnp.bfloat16)
    Hp, Wp = H + 2, W + 2

    # Weights: (3,3,Cin,Cout) -> (Cout, 9*Cin), columns ordered (ky, kx, cin).
    w2 = jnp.transpose(w_hwio.reshape(9 * Cin, Cout), (1, 0)).astype(jnp.bfloat16)
    b2 = bias.reshape(Cout, 1).astype(jnp.float32)
    a2 = jnp.asarray(alpha, jnp.float32).reshape(1, 1)

    needed = (2 * Hp * Wp * Cin * 2 + _vmem_step_bytes(TH, W, Cin, Cout)
              + Cout * 9 * Cin * 2 + Cout * 4)
    vmem_limit = int(min(max(2 * needed, 32 * 1024 * 1024), 96 * 1024 * 1024))

    conv_flat = pl.pallas_call(
        _conv3x3_prelu_kernel,
        out_shape=jax.ShapeDtypeStruct((N, Cout, H * W), jnp.bfloat16),
        grid_spec=pltpu.PrefetchScalarGridSpec(
            num_scalar_prefetch=0,
            grid=(N, nH),
            in_specs=[
                pl.BlockSpec((1, Hp, Wp, Cin), lambda n, h: (n, 0, 0, 0)),
                pl.BlockSpec((Cout, 9 * Cin), lambda n, h: (0, 0)),
                pl.BlockSpec((Cout, 1), lambda n, h: (0, 0)),
                pl.BlockSpec((1, 1), lambda n, h: (0, 0),
                             memory_space=pltpu.MemorySpace.SMEM),
            ],
            out_specs=pl.BlockSpec((1, Cout, TH * W), lambda n, h: (n, 0, h)),
        ),
        compiler_params=pltpu.CompilerParams(
            # h marked "arbitrary": a megacore split on h would duplicate the
            # h-invariant full-image block per core; shard on batch instead.
            dimension_semantics=("parallel", "arbitrary"),
            vmem_limit_bytes=vmem_limit),
    )(x_pad, w2, b2, a2)

    # conv_flat is exactly the NCHW conv output (bias + PReLU already applied;
    # valid because the single-slope PReLU commutes with the channel->space
    # permutation).  PixelShuffle (+ optional upcast) is ONE fused XLA pass
    # over the bf16 result.
    y = conv_flat.reshape(N, Cin, r, r, H, W)
    y = jnp.transpose(y, (0, 1, 4, 2, 5, 3)).reshape(N, Cin, H * r, W * r)
    return y.astype(out_dtype)


def _reference_forward(x_nchw, w_hwio, bias, alpha, up_scale):
    """Pure-JAX reference (lax conv in NCHW/OIHW) for correctness check."""
    N, Cin, H, W = x_nchw.shape
    w_oihw = jnp.transpose(w_hwio, (3, 2, 0, 1))  # (Cout, Cin, 3, 3)
    conv = lax.conv_general_dilated(
        x_nchw, w_oihw, window_strides=(1, 1), padding=((1, 1), (1, 1)),
        dimension_numbers=("NCHW", "OIHW", "NCHW"))
    conv = conv + bias.reshape(1, -1, 1, 1)
    r = up_scale
    y = conv.reshape(N, Cin, r, r, H, W)
    y = jnp.transpose(y, (0, 1, 4, 2, 5, 3)).reshape(N, Cin, H * r, W * r)
    return jnp.where(y > 0, y, alpha * y)


if __name__ == "__main__":
    key = jax.random.PRNGKey(0)
    k_x, k_w, k_b = jax.random.split(key, 3)

    N, Cin, H, W = 2, 4, 16, 16
    up_scale = 2
    Cout = Cin * up_scale ** 2

    x = jax.random.normal(k_x, (N, Cin, H, W), dtype=jnp.float32)

    # Deterministic parameter init (shapes per Conv2d(Cin, Cin*r^2, 3, pad=1)).
    fan_in = Cin * 3 * 3
    bound = 1.0 / jnp.sqrt(fan_in)
    w_hwio = jax.random.uniform(k_w, (3, 3, Cin, Cout), jnp.float32,
                                minval=-bound, maxval=bound)
    bias = jax.random.uniform(k_b, (Cout,), jnp.float32,
                              minval=-bound, maxval=bound)
    alpha = jnp.float32(0.25)  # PReLU() default init (single shared slope)

    out = upsample_block_forward(x, w_hwio, bias, alpha, up_scale)
    out = jax.block_until_ready(out)

    # Like-for-like reference: the kernel uses bf16 operands with f32
    # accumulation and stores the conv output in bf16, so compare against the
    # bf16-rounded inputs in f32 with a tolerance covering one bf16 rounding.
    xq = x.astype(jnp.bfloat16).astype(jnp.float32)
    wq = w_hwio.astype(jnp.bfloat16).astype(jnp.float32)
    ref = _reference_forward(xq, wq, bias, alpha, up_scale)

    assert out.shape == (N, Cin, H * up_scale, W * up_scale)
    assert out.dtype == jnp.float32
    assert jnp.allclose(out, ref, atol=2e-2, rtol=2e-2), \
        float(jnp.max(jnp.abs(out - ref)))

    print("KERNEL_OK")
</pallas_src>

<mosaic_0001>
module attributes {stable_mosaic.version = 11 : i64} {
  func.func @_conv3x3_prelu_kernel(%arg0: i32, %arg1: i32, %arg2: memref<1x18x18x4xbf16, #tpu.memory_space<vmem>>, %arg3: memref<16x36xbf16, #tpu.memory_space<vmem>>, %arg4: memref<16x1xf32, #tpu.memory_space<vmem>>, %arg5: memref<1x1xf32, #tpu.memory_space<smem>>, %arg6: memref<1x16x256xbf16, #tpu.memory_space<vmem>>) attributes {dimension_semantics = [#tpu.dimension_semantics<parallel>, #tpu.dimension_semantics<arbitrary>], iteration_bounds = array<i64: 2, 1>, scalar_prefetch = 0 : i64, scratch_operands = 0 : i64, tpu.core_type = #tpu.core_type<tc>, window_params = [{transform_indices = @transform_0, window_bounds = array<i64: 1, 18, 18, 4>}, {pipeline_mode = #tpu.pipeline_mode<synchronous>, transform_indices = @transform_1, window_bounds = array<i64: 16, 36>}, {pipeline_mode = #tpu.pipeline_mode<synchronous>, transform_indices = @transform_2, window_bounds = array<i64: 16, 1>}, {transform_indices = @transform_3, window_bounds = array<i64: 1, 1>}, {transform_indices = @transform_4, window_bounds = array<i64: 1, 16, 256>}]} {
    %c16_i32 = arith.constant 16 : i32
    %0 = arith.muli %arg1, %c16_i32 : i32
    %1 = tpu.assume_multiple %0, 8 : i32
    %c0 = arith.constant 0 : index
    %2 = arith.index_cast %1 : i32 to index
    %c0_0 = arith.constant 0 : index
    %c0_1 = arith.constant 0 : index
    %3 = vector.load %arg2[%c0, %2, %c0_0, %c0_1] : memref<1x18x18x4xbf16, #tpu.memory_space<vmem>>, vector<1x18x18x4xbf16>
    %4 = vector.shape_cast %3 : vector<1x18x18x4xbf16> to vector<18x18x4xbf16>
    %5 = vector.extract_strided_slice %4 {offsets = [0, 0, 0], sizes = [16, 16, 4], strides = [1, 1, 1]} : vector<18x18x4xbf16> to vector<16x16x4xbf16>
    %6 = vector.shape_cast %5 : vector<16x16x4xbf16> to vector<256x4xbf16>
    %c0_2 = arith.constant 0 : index
    %c0_3 = arith.constant 0 : index
    %7 = vector.load %arg3[%c0_2, %c0_3] : memref<16x36xbf16, #tpu.memory_space<vmem>>, vector<16x4xbf16>
    %cst = arith.constant dense<0.000000e+00> : vector<16x256xf32>
    %8 = tpu.matmul %7, %6, %cst {dimension_numbers = #tpu.dot_dimension_numbers<[1], [1], [0], [0], [0, 0, 1, 0], [], []>} : vector<16x4xbf16>, vector<256x4xbf16>, vector<16x256xf32> -> vector<16x256xf32>
    %9 = vector.extract_strided_slice %4 {offsets = [0, 1, 0], sizes = [16, 16, 4], strides = [1, 1, 1]} : vector<18x18x4xbf16> to vector<16x16x4xbf16>
    %10 = vector.shape_cast %9 : vector<16x16x4xbf16> to vector<256x4xbf16>
    %c0_4 = arith.constant 0 : index
    %c4 = arith.constant 4 : index
    %11 = vector.load %arg3[%c0_4, %c4] : memref<16x36xbf16, #tpu.memory_space<vmem>>, vector<16x4xbf16>
    %cst_5 = arith.constant dense<0.000000e+00> : vector<16x256xf32>
    %12 = tpu.matmul %11, %10, %cst_5 {dimension_numbers = #tpu.dot_dimension_numbers<[1], [1], [0], [0], [0, 0, 1, 0], [], []>} : vector<16x4xbf16>, vector<256x4xbf16>, vector<16x256xf32> -> vector<16x256xf32>
    %13 = arith.addf %8, %12 : vector<16x256xf32>
    %14 = vector.extract_strided_slice %4 {offsets = [0, 2, 0], sizes = [16, 16, 4], strides = [1, 1, 1]} : vector<18x18x4xbf16> to vector<16x16x4xbf16>
    %15 = vector.shape_cast %14 : vector<16x16x4xbf16> to vector<256x4xbf16>
    %c0_6 = arith.constant 0 : index
    %c8 = arith.constant 8 : index
    %16 = vector.load %arg3[%c0_6, %c8] : memref<16x36xbf16, #tpu.memory_space<vmem>>, vector<16x4xbf16>
    %cst_7 = arith.constant dense<0.000000e+00> : vector<16x256xf32>
    %17 = tpu.matmul %16, %15, %cst_7 {dimension_numbers = #tpu.dot_dimension_numbers<[1], [1], [0], [0], [0, 0, 1, 0], [], []>} : vector<16x4xbf16>, vector<256x4xbf16>, vector<16x256xf32> -> vector<16x256xf32>
    %18 = arith.addf %13, %17 : vector<16x256xf32>
    %19 = vector.extract_strided_slice %4 {offsets = [1, 0, 0], sizes = [16, 16, 4], strides = [1, 1, 1]} : vector<18x18x4xbf16> to vector<16x16x4xbf16>
    %20 = vector.shape_cast %19 : vector<16x16x4xbf16> to vector<256x4xbf16>
    %c0_8 = arith.constant 0 : index
    %c12 = arith.constant 12 : index
    %21 = vector.load %arg3[%c0_8, %c12] : memref<16x36xbf16, #tpu.memory_space<vmem>>, vector<16x4xbf16>
    %cst_9 = arith.constant dense<0.000000e+00> : vector<16x256xf32>
    %22 = tpu.matmul %21, %20, %cst_9 {dimension_numbers = #tpu.dot_dimension_numbers<[1], [1], [0], [0], [0, 0, 1, 0], [], []>} : vector<16x4xbf16>, vector<256x4xbf16>, vector<16x256xf32> -> vector<16x256xf32>
    %23 = arith.addf %18, %22 : vector<16x256xf32>
    %24 = vector.extract_strided_slice %4 {offsets = [1, 1, 0], sizes = [16, 16, 4], strides = [1, 1, 1]} : vector<18x18x4xbf16> to vector<16x16x4xbf16>
    %25 = vector.shape_cast %24 : vector<16x16x4xbf16> to vector<256x4xbf16>
    %c0_10 = arith.constant 0 : index
    %c16 = arith.constant 16 : index
    %26 = vector.load %arg3[%c0_10, %c16] : memref<16x36xbf16, #tpu.memory_space<vmem>>, vector<16x4xbf16>
    %cst_11 = arith.constant dense<0.000000e+00> : vector<16x256xf32>
    %27 = tpu.matmul %26, %25, %cst_11 {dimension_numbers = #tpu.dot_dimension_numbers<[1], [1], [0], [0], [0, 0, 1, 0], [], []>} : vector<16x4xbf16>, vector<256x4xbf16>, vector<16x256xf32> -> vector<16x256xf32>
    %28 = arith.addf %23, %27 : vector<16x256xf32>
    %29 = vector.extract_strided_slice %4 {offsets = [1, 2, 0], sizes = [16, 16, 4], strides = [1, 1, 1]} : vector<18x18x4xbf16> to vector<16x16x4xbf16>
    %30 = vector.shape_cast %29 : vector<16x16x4xbf16> to vector<256x4xbf16>
    %c0_12 = arith.constant 0 : index
    %c20 = arith.constant 20 : index
    %31 = vector.load %arg3[%c0_12, %c20] : memref<16x36xbf16, #tpu.memory_space<vmem>>, vector<16x4xbf16>
    %cst_13 = arith.constant dense<0.000000e+00> : vector<16x256xf32>
    %32 = tpu.matmul %31, %30, %cst_13 {dimension_numbers = #tpu.dot_dimension_numbers<[1], [1], [0], [0], [0, 0, 1, 0], [], []>} : vector<16x4xbf16>, vector<256x4xbf16>, vector<16x256xf32> -> vector<16x256xf32>
    %33 = arith.addf %28, %32 : vector<16x256xf32>
    %34 = vector.extract_strided_slice %4 {offsets = [2, 0, 0], sizes = [16, 16, 4], strides = [1, 1, 1]} : vector<18x18x4xbf16> to vector<16x16x4xbf16>
    %35 = vector.shape_cast %34 : vector<16x16x4xbf16> to vector<256x4xbf16>
    %c0_14 = arith.constant 0 : index
    %c24 = arith.constant 24 : index
    %36 = vector.load %arg3[%c0_14, %c24] : memref<16x36xbf16, #tpu.memory_space<vmem>>, vector<16x4xbf16>
    %cst_15 = arith.constant dense<0.000000e+00> : vector<16x256xf32>
    %37 = tpu.matmul %36, %35, %cst_15 {dimension_numbers = #tpu.dot_dimension_numbers<[1], [1], [0], [0], [0, 0, 1, 0], [], []>} : vector<16x4xbf16>, vector<256x4xbf16>, vector<16x256xf32> -> vector<16x256xf32>
    %38 = arith.addf %33, %37 : vector<16x256xf32>
    %39 = vector.extract_strided_slice %4 {offsets = [2, 1, 0], sizes = [16, 16, 4], strides = [1, 1, 1]} : vector<18x18x4xbf16> to vector<16x16x4xbf16>
    %40 = vector.shape_cast %39 : vector<16x16x4xbf16> to vector<256x4xbf16>
    %c0_16 = arith.constant 0 : index
    %c28 = arith.constant 28 : index
    %41 = vector.load %arg3[%c0_16, %c28] : memref<16x36xbf16, #tpu.memory_space<vmem>>, vector<16x4xbf16>
    %cst_17 = arith.constant dense<0.000000e+00> : vector<16x256xf32>
    %42 = tpu.matmul %41, %40, %cst_17 {dimension_numbers = #tpu.dot_dimension_numbers<[1], [1], [0], [0], [0, 0, 1, 0], [], []>} : vector<16x4xbf16>, vector<256x4xbf16>, vector<16x256xf32> -> vector<16x256xf32>
    %43 = arith.addf %38, %42 : vector<16x256xf32>
    %44 = vector.extract_strided_slice %4 {offsets = [2, 2, 0], sizes = [16, 16, 4], strides = [1, 1, 1]} : vector<18x18x4xbf16> to vector<16x16x4xbf16>
    %45 = vector.shape_cast %44 : vector<16x16x4xbf16> to vector<256x4xbf16>
    %c0_18 = arith.constant 0 : index
    %c32 = arith.constant 32 : index
    %46 = vector.load %arg3[%c0_18, %c32] : memref<16x36xbf16, #tpu.memory_space<vmem>>, vector<16x4xbf16>
    %cst_19 = arith.constant dense<0.000000e+00> : vector<16x256xf32>
    %47 = tpu.matmul %46, %45, %cst_19 {dimension_numbers = #tpu.dot_dimension_numbers<[1], [1], [0], [0], [0, 0, 1, 0], [], []>} : vector<16x4xbf16>, vector<256x4xbf16>, vector<16x256xf32> -> vector<16x256xf32>
    %48 = arith.addf %43, %47 : vector<16x256xf32>
    %c0_20 = arith.constant 0 : index
    %c0_21 = arith.constant 0 : index
    %49 = vector.load %arg4[%c0_20, %c0_21] : memref<16x1xf32, #tpu.memory_space<vmem>>, vector<16x1xf32>
    %50 = vector.broadcast %49 : vector<16x1xf32> to vector<16x256xf32>
    %51 = arith.addf %48, %50 : vector<16x256xf32>
    %c0_22 = arith.constant 0 : index
    %c0_23 = arith.constant 0 : index
    %52 = memref.load %arg5[%c0_22, %c0_23] : memref<1x1xf32, #tpu.memory_space<smem>>
    %cst_24 = arith.constant 0.000000e+00 : f32
    %53 = vector.broadcast %cst_24 : f32 to vector<16x256xf32>
    %54 = arith.cmpf ogt, %51, %53 : vector<16x256xf32>
    %55 = vector.broadcast %52 : f32 to vector<16x256xf32>
    %56 = arith.mulf %55, %51 : vector<16x256xf32>
    %57 = arith.select %54, %51, %56 : vector<16x256xi1>, vector<16x256xf32>
    %58 = vector.shape_cast %57 : vector<16x256xf32> to vector<1x16x256xf32>
    %59 = arith.truncf %58 : vector<1x16x256xf32> to vector<1x16x256xbf16>
    %c0_25 = arith.constant 0 : index
    %c0_26 = arith.constant 0 : index
    %c0_27 = arith.constant 0 : index
    %60 = vector.load %arg6[%c0_25, %c0_26, %c0_27] : memref<1x16x256xbf16, #tpu.memory_space<vmem>>, vector<1x16x256xbf16>
    tpu.vector_store %arg6[%c0_25, %c0_26, %c0_27], %59 {strides = array<i32>} : memref<1x16x256xbf16, #tpu.memory_space<vmem>>, vector<1x16x256xbf16>,
    return
  }
  func.func @transform_0(%arg0: i32, %arg1: i32) -> (i32, i32, i32, i32) {
    %c0_i32 = arith.constant 0 : i32
    %c0_i32_0 = arith.constant 0 : i32
    %c0_i32_1 = arith.constant 0 : i32
    %c0_i32_2 = arith.constant 0 : i32
    return %arg0, %c0_i32, %c0_i32_0, %c0_i32_1 : i32, i32, i32, i32
  }
  func.func @transform_1(%arg0: i32, %arg1: i32) -> (i32, i32) {
    %c0_i32 = arith.constant 0 : i32
    %c0_i32_0 = arith.constant 0 : i32
    %c0_i32_1 = arith.constant 0 : i32
    return %c0_i32, %c0_i32_0 : i32, i32
  }
  func.func @transform_2(%arg0: i32, %arg1: i32) -> (i32, i32) {
    %c0_i32 = arith.constant 0 : i32
    %c0_i32_0 = arith.constant 0 : i32
    %c0_i32_1 = arith.constant 0 : i32
    return %c0_i32, %c0_i32_0 : i32, i32
  }
  func.func @transform_3(%arg0: i32, %arg1: i32) -> (i32, i32) {
    %c0_i32 = arith.constant 0 : i32
    %c0_i32_0 = arith.constant 0 : i32
    %c0_i32_1 = arith.constant 0 : i32
    return %c0_i32, %c0_i32_0 : i32, i32
  }
  func.func @transform_4(%arg0: i32, %arg1: i32) -> (i32, i32, i32) {
    %c0_i32 = arith.constant 0 : i32
    %c0_i32_0 = arith.constant 0 : i32
    return %arg0, %c0_i32, %arg1 : i32, i32, i32
  }
}

</mosaic_0001>

<bundles_post_ra>
// kernel: tpu_custom_call.1
= control target key start
LH: loop header
LB: loop body
LE: loop exit
PB: predicated region body
PF: predicated region fallthrough
CT: control target
= control target key end

     0   :  { %s3473_s0 = inlined_call_operand.vmem [shape: bf16[2,18,18,4], index: 0, kind: input, shape index: {}]   ;;  %s3474_s1 = inlined_call_operand.vmem [shape: bf16[16,36], index: 1, kind: input, shape index: {}]   ;;  %s3475_s2 = inlined_call_operand.vmem [shape: f32[16,1], index: 2, kind: input, shape index: {}]   ;;  %s3476_s3 = inlined_call_operand.<no memory space> [shape: f32[1,1], index: 3, kind: input, shape index: {}]   ;;  %s3477_s4 = inlined_call_operand.hbm [shape: bf16[2,16,256], index: 4, kind: output, shape index: {}]  }
   0x1   :  { %9 = sst [smem:[#allocation2]] %s3476_s3 }
   0x2   :  { %10 = vsyncpa [#allocation4], 0 }
   0x3   :  { %12 = vsyncpa [#allocation4 + $0x1], 0  ;;  %s2398_s17 = smov 0   ;;  %s2400_s18 = smov 0  }
   0x4   :  { %s2402_s19 = smov 0   ;;  %s2404_s20 = smov 0  }
   0x5   :  { %s2406_s21 = smov 0   ;;  %s2408_s22 = smov 0  }
   0x6 LB: > { %s1814_s3 = sadd.s32 4294967295, %s2356_s22   ;;  %s1815_s23 = sadd.s32 4294967294, %s2356_s22   ;;  %s2356_s22 = sphi %s2408_s22, %s18_s22   ;;  %s2352_s21 = sphi %s2406_s21, %s3573_s21   ;;  %s2348_s20 = sphi %s2404_s20, %s3572_s20   ;;  %s2344_s19 = sphi %s2402_s19, %s3571_s19   ;;  %s2340_s18 = sphi %s2400_s18, %s3570_s18   ;;  %s2336_s17 = sphi %s2398_s17, %s3569_s17  }
   0x7   : > { %s30_s24 = sadd.s32 1, %s2352_s21  ;;  %s128_s25 = sadd.s32 1, %s2344_s19 }
   0x8   : > { %p32_p0 = scmp.ge.s32.totalorder %s30_s24, 2  ;;  %p138_p1 = scmp.ne.s32.totalorder %s2344_s19, %s2340_s18 }
   0x9   : > { %p139_p2 = scmp.eq.s32.totalorder %s1814_s3, 1  ;;  %p144_p3 = scmp.ne.s32.totalorder %s2340_s18, %s2336_s17 }
   0xa   : > { %s3575_s24 = smov (%p32_p0, %s30_s24), 0  ;;  %p145_p5 = scmp.eq.s32.totalorder %s1815_s23, 1 }
   0xb   : > { %p2438_p4 = por %p139_p2, %p138_p1  ;;  %s123_s27 = ssub.s32 %s2352_s21, %s3575_s24 }
   0xc   : > { %p1818_p6 = scmp.ge.s32.totalorder %s2356_s22, 1  ;;  %p126_p7 = scmp.eq.s32.totalorder %s123_s27, 0 }
   0xd   : > { %p2445_p8 = por %p145_p5, %p144_p3  ;;  %p180_p9 = scmp.lt.s32.totalorder %s2356_s22, 3 }
   0xe   : > { %s2451_s29 = scalar_select %p126_p7, %s2344_s19, %s128_s25  }
   0xf   : > { %p181_p10 = pnand %p1818_p6, %p180_p9 }
  0x11   : > { %184 = sbr.rel (%p181_p10) target bundleno = 636 (0x27c), region = 36 }
  0x18   : > { %v2456_v0 = vld [vmem:[%s3474_s1] sm:$0xff]   ;;  %p206_p11 = scmp.lt.s32.totalorder %s2348_s20, 1  ;;  %s2358_s6 = smov 112   ;;  %vm273_vm0 = vsmask.f32 3328  ;;  %v3509_v26 = vmov 0 }
  0x19   : > { %1347 = vrot.lane.b32.xlu0 %v2456_v0, %s2358_s6  ;;  %s2359_s8 = smov 108   ;;  %s2360_s10 = smov 124   ;;  %vm274_vm1 = vsmask.f32 7440  ;;  %vm715_vm3 = vcmask 31744   ;;  %vm1000_vm4 = vcmask 1042432  }
  0x1a   : > { %s207_s7 = scalar_select %p206_p11, %s2348_s20, 1  ;;  %1413 = vrot.lane.b32.xlu1 %v2456_v0, %s2359_s8  ;;  %vm2506_vm2 = vmor %vm273_vm0, %vm274_vm1  ;;  %vm1001_vm5 = vcmask 1046532  }
  0x1b   : > { %s2361_s14 = smov 104   ;;  %s2362_s15 = smov 120   ;;  %v3510_v26 = vsel %vm2506_vm2, 4294967295, %v3509_v26  ;;  %vm2862_vm6 = vmor %vm1000_vm4, %vm1001_vm5 }
  0x1c   : > { %s2179_s9 = smul.u32 216, %s207_s7  ;;  %3511 = vst [vmem:[#allocation6_spill] sm:$0xff] %v3510_v26  ;;  %s2363_s16 = smov 100  }
  0x1d   : > { %665 = vrot.lane.b32.xlu0 %v2456_v0, %s2360_s10  ;;  %s2364_s3 = smov 116   ;;  %s2365_s27 = smov 96  }
  0x1e   : > { %s2466_s13 = scalar_lea.vmem %s3473_s0, %s2179_s9  ;;  %1471 = vrot.lane.b32.xlu1 %v2456_v0, %s2361_s14  ;;  %s1695_s8 = sld [smem:[#allocation2]] }
  0x1f   : > { %v2470_v1 = vld [vmem:[%s2466_s13 + $0x6c] sm:$0xf]  ;;  %v2473_v2 = vld [vmem:[%s2466_s13 + $0x70] sm:$0xf]  ;;  %v2476_v3 = vld [vmem:[%s2466_s13 + $0x74] sm:$0x1] }
  0x20   : > { %v493_v4 = vshrl.u32 %v2470_v1, 16  ;;  %v496_v5 = vshll.u32 %v2470_v1, 16  ;;  %v502_v6 = vshll.u32 %v2473_v2, 16  ;;  %v506_v7 = vshrl.u32 %v2473_v2, 16  ;;  %v2483_v8 = vld [vmem:[%s2466_s13 + $0xc] sm:$0xf] }
  0x21   : > { %v512_v9 = vshll.u32 %v2476_v3, 16  ;;  %v2487_v10 = vld [vmem:[%s2466_s13 + $0x10] sm:$0xf]  ;;  %v2490_v11 = vld [vmem:[%s2466_s13 + $0x14] sm:$0x1]  ;;  %1115 = vrot.lane.b32.xlu0 %v2456_v0, %s2362_s15  ;;  %v301_v17 = vshrl.u32 %v2483_v8, 16 }
  0x22   : > { %v495_v12 = vrot.slane %v493_v4, 4  ;;  %v498_v13 = vrot.slane %v496_v5, 5  ;;  %v504_v14 = vrot.slane %v502_v6, 5  ;;  %v508_v15 = vrot.slane %v506_v7, 4  ;;  %v2499_v24 = vld [vmem:[%s2466_s13 + $0x60] sm:$0xf]  ;;  %1555 = vrot.lane.b32.xlu1 %v2456_v0, %s2363_s16 }
  0x23   : > { %v514_v16 = vrot.slane %v512_v9, 5  ;;  %v304_v18 = vshll.u32 %v2483_v8, 16  ;;  %v310_v19 = vshll.u32 %v2487_v10, 16  ;;  %v314_v22 = vshrl.u32 %v2487_v10, 16  ;;  %v2502_v25 = vld [vmem:[%s2466_s13 + $0x64] sm:$0xf] }
  0x24   : > { %v499_v20 = vor.u32 %v498_v13, %v495_v12  ;;  %v509_v21 = vor.u32 %v508_v15, %v504_v14  ;;  %v320_v23 = vshll.u32 %v2490_v11, 16  ;;  %v303_v27 = vrot.slane %v301_v17, 4  ;;  %v243_v35 = vld [vmem:[%s2466_s13 + $0x68] sm:$0x1]  ;;  %v2520_v43 = vld [vmem:[%s2466_s13] sm:$0xf] }
  0x25   : > { %v306_v28 = vrot.slane %v304_v18, 5  ;;  %v312_v29 = vrot.slane %v310_v19, 5  ;;  %v316_v32 = vrot.slane %v314_v22, 4  ;;  %v469_v36 = vshrl.u32 %v2499_v24, 16  ;;  %3512 = vst [vmem:[#allocation7_spill] sm:$0xff] %v2520_v43  ;;  %1263 = vrot.lane.b32.xlu0 %v2456_v0, %s2364_s3  ;;  %s203_s9 = sand.u32 1, %s2340_s18  }
  0x26   : > { %v500_v30 = vrot.slane %v499_v20, 4  ;;  %v510_v31 = vrot.slane %v509_v21, 4  ;;  %v322_v33 = vrot.slane %v320_v23, 5  ;;  %v472_v37 = vshll.u32 %v2499_v24, 16  ;;  %v2525_v52 = vld [vmem:[%s2466_s13 + $0x4] sm:$0xf] }
  0x27   : > { %v307_v34 = vor.u32 %v306_v28, %v303_v27  ;;  %v478_v38 = vshll.u32 %v2502_v25, 16  ;;  %v317_v41 = vor.u32 %v316_v32, %v312_v29  ;;  %v482_v42 = vshrl.u32 %v2502_v25, 16  ;;  %3514 = vst [vmem:[#allocation9_spill] sm:$0xff] %v2525_v52  ;;  %v219_v55 = vld [vmem:[%s2466_s13 + $0x8] sm:$0x1]  ;;  %s1819_s10 = sshll.u32 %s203_s9, 4 }
  0x28   : > { %v505_v39 = vsel %vm2506_vm2, %v500_v30, %v504_v14  ;;  %v515_v40 = vsel %vm2506_vm2, %v510_v31, %v514_v16  ;;  %v471_v46 = vrot.slane %v469_v36, 4  ;;  %v474_v47 = vrot.slane %v472_v37, 5  ;;  %v2538_v5 = vld [vmem:[%s2466_s13 + $0x78] sm:$0xf]  ;;  %v2542_v13 = vld [vmem:[%s2466_s13 + $0x7c] sm:$0xf] }
  0x29   : > { %v2522_v44 = vcombine.low %v505_v39, %v515_v40  ;;  %v308_v45 = vrot.slane %v307_v34, 4  ;;  %v318_v48 = vrot.slane %v317_v41, 4  ;;  %v480_v49 = vrot.slane %v478_v38, 5  ;;  %v2550_v17 = vld [vmem:[%s2466_s13 + $0x80] sm:$0x1]  ;;  %s1912_s11 = sshll.u32 %s2348_s20, 8 }
  0x2a   : > { %v484_v50 = vrot.slane %v482_v42, 4  ;;  %v488_v51 = vshll.u32 %v243_v35, 16  ;;  %v475_v54 = vor.u32 %v474_v47, %v471_v46  ;;  %v277_v56 = vshrl.u32 %v2520_v43, 16  ;;  %v2556_v22 = vld [vmem:[%s2466_s13 + $0x18] sm:$0xf]  ;;  %s205_s12 = scalar_lea.vmem [#allocation3], %s1819_s10  ;;  %s3421_s16 = scalar_lea.hbm %s3477_s4, %s1912_s11 }
  0x2b   : > { %3513 = vst [vmem:[#allocation8_spill] sm:$0xff] %v2522_v44  ;;  %2139 = vmatprep.subr.msk.bf16.mxu0 %vm715_vm3, %v2522_v44  ;;  %v313_v53 = vsel %vm2506_vm2, %v308_v45, %v312_v29  ;;  %v323_v57 = vsel %vm2506_vm2, %v318_v48, %v322_v33  ;;  %v280_v60 = vshll.u32 %v2520_v43, 16  ;;  %v286_v4 = vshll.u32 %v2525_v52, 16  ;;  %v2566_v34 = vld [vmem:[%s2466_s13 + $0x1c] sm:$0xf]  ;;  %s3427_s20 = scalar_lea.sflag [#allocation4], %s203_s9 }
  0x2c   : > { %v485_v58 = vor.u32 %v484_v50, %v480_v49  ;;  %v490_v59 = vrot.slane %v488_v51, 5  ;;  %v1823_v61 = vcombine.low %v313_v53, %v323_v57  ;;  %v476_v62 = vrot.slane %v475_v54, 4  ;;  %v2571_v38 = vld [vmem:[%s2466_s13 + $0x20] sm:$0x1]  ;;  %v2579_v50 = vld [vmem:[%s2466_s13 + $0x84] sm:$0xf] }
  0x2d   : > { %v279_v63 = vrot.slane %v277_v56, 4  ;;  %v282_v7 = vrot.slane %v280_v60, 5  ;;  %v290_v9 = vshrl.u32 %v2525_v52, 16  ;;  %v296_v12 = vshll.u32 %v219_v55, 16  ;;  %v2586_v60 = vld [vmem:[%s2466_s13 + $0x88] sm:$0xf] }
  0x2e   : > { %v486_v6 = vrot.slane %v485_v58, 4  ;;  %v2545_v14 = vsel %vm715_vm3, %v1823_v61, 0  ;;  %v481_v15 = vsel %vm2506_vm2, %v476_v62, %v480_v49  ;;  %v288_v16 = vrot.slane %v286_v4, 5  ;;  %v2772_v52 = vld [vmem:[%s2466_s13 + $0xb8] sm:$0xf]  ;;  %s2367_s23 = smov [#allocation3]  }
  0x2f   : > { %1986 = vmatpush3.bf16.xpose.msra.mxu0 %v2545_v14  ;;  %v283_v19 = vor.u32 %v282_v7, %v279_v63  ;;  %v292_v20 = vrot.slane %v290_v9, 4  ;;  %v298_v21 = vrot.slane %v296_v12, 5  ;;  %v517_v27 = vshrl.u32 %v2538_v5, 16  ;;  %v2593_v12 = vld [vmem:[%s2466_s13 + $0x8c] sm:$0x1]  ;;  %s2282_s25 = sshll.u32 %s2367_s23, 4  ;;  %s2283_s25 = int_to_ptr.vmem [resolvable:$false] %s2282_s25 }
  0x30   : > { %v491_v18 = vsel %vm2506_vm2, %v486_v6, %v490_v59  ;;  %v520_v28 = vshll.u32 %v2538_v5, 16  ;;  %v526_v29 = vshll.u32 %v2542_v13, 16  ;;  %v530_v32 = vshrl.u32 %v2542_v13, 16 }
  0x31   : > { %v2558_v23 = vcombine.low %v481_v15, %v491_v18  ;;  %v284_v30 = vrot.slane %v283_v19, 4  ;;  %v293_v31 = vor.u32 %v292_v20, %v288_v16  ;;  %v536_v33 = vshll.u32 %v2550_v17, 16 }
  0x32   : > { %v519_v35 = vrot.slane %v517_v27, 4  ;;  %v522_v36 = vrot.slane %v520_v28, 5  ;;  %v528_v37 = vrot.slane %v526_v29, 5  ;;  %v325_v39 = vshrl.u32 %v2556_v22, 16 }
  0x33   : > { %2107 = vmatprep.subr.msk.bf16.mxu1 %vm715_vm3, %v2558_v23  ;;  %v289_v40 = vsel %vm2506_vm2, %v284_v30, %v288_v16  ;;  %v294_v41 = vrot.slane %v293_v31, 4  ;;  %v532_v42 = vrot.slane %v530_v32, 4  ;;  %v538_v45 = vrot.slane %v536_v33, 5  ;;  %v2597_v16 = vld [vmem:[%s2466_s13 + $0x24] sm:$0xf] }
  0x34   : > { %v523_v46 = vor.u32 %v522_v36, %v519_v35  ;;  %v327_v47 = vrot.slane %v325_v39, 4  ;;  %v328_v48 = vshll.u32 %v2556_v22, 16  ;;  %v334_v49 = vshll.u32 %v2566_v34, 16  ;;  %v2608_v31 = vld [vmem:[%s2466_s13 + $0x28] sm:$0xf] }
  0x35   : > { %v299_v51 = vsel %vm2506_vm2, %v294_v41, %v298_v21  ;;  %v533_v53 = vor.u32 %v532_v42, %v528_v37  ;;  %v338_v54 = vshrl.u32 %v2566_v34, 16  ;;  %v344_v55 = vshll.u32 %v2571_v38, 16  ;;  %v2617_v41 = vld [vmem:[%s2466_s13 + $0x2c] sm:$0x1] }
  0x36   : > { %v1822_v56 = vcombine.low %v289_v40, %v299_v51  ;;  %v524_v57 = vrot.slane %v523_v46, 4  ;;  %v330_v58 = vrot.slane %v328_v48, 5  ;;  %v336_v59 = vrot.slane %v334_v49, 5 }
  0x37   : > { %v534_v61 = vrot.slane %v533_v53, 4  ;;  %v340_v62 = vrot.slane %v338_v54, 4  ;;  %v346_v63 = vrot.slane %v344_v55, 5  ;;  %v541_v4 = vshrl.u32 %v2579_v50, 16 }
  0x38   : > { %v720_v6 = vsel %vm715_vm3, %v1822_v56, 0  ;;  %v529_v7 = vsel %vm2506_vm2, %v524_v57, %v528_v37  ;;  %v331_v9 = vor.u32 %v330_v58, %v327_v47  ;;  %v544_v15 = vshll.u32 %v2579_v50, 16 }
  0x39   : > { %1914 = vmatpush3.bf16.xpose.msra.mxu1 %v720_v6  ;;  %v539_v18 = vsel %vm2506_vm2, %v534_v61, %v538_v45  ;;  %v341_v19 = vor.u32 %v340_v62, %v336_v59  ;;  %v543_v20 = vrot.slane %v541_v4, 4  ;;  %v550_v21 = vshll.u32 %v2586_v60, 16  ;;  %v2621_v45 = vld [vmem:[%s2466_s13 + $0x90] sm:$0xf] }
  0x3a   : > { %v2602_v27 = vcombine.low %v529_v7, %v539_v18  ;;  %v332_v28 = vrot.slane %v331_v9, 4  ;;  %2108 = vmatprep.subr.msk.bf16.mxu1 %vm715_vm3, %v2522_v44  ;;  %v546_v29 = vrot.slane %v544_v15, 5  ;;  %v554_v30 = vshrl.u32 %v2586_v60, 16  ;;  %v2638_v7 = vld [vmem:[%s2466_s13 + $0x98] sm:$0x1] }
  0x3b   : > { %v342_v32 = vrot.slane %v341_v19, 4  ;;  %v552_v33 = vrot.slane %v550_v21, 5  ;;  %v560_v35 = vshll.u32 %v2593_v12, 16  ;;  %v349_v36 = vshrl.u32 %v2597_v16, 16 }
  0x3c   : > { %3515 = vst [vmem:[#allocation10_spill] sm:$0xff] %v2602_v27  ;;  %2140 = vmatprep.subr.msk.bf16.mxu0 %vm715_vm3, %v2602_v27  ;;  %v337_v37 = vsel %vm2506_vm2, %v332_v28, %v336_v59  ;;  %v547_v39 = vor.u32 %v546_v29, %v543_v20  ;;  %v556_v40 = vrot.slane %v554_v30, 4  ;;  %v352_v42 = vshll.u32 %v2597_v16, 16  ;;  %v2629_v59 = vld [vmem:[%s2466_s13 + $0x94] sm:$0xf] }
  0x3d   : > { %v347_v46 = vsel %vm2506_vm2, %v342_v32, %v346_v63  ;;  %v562_v47 = vrot.slane %v560_v35, 5  ;;  %v351_v48 = vrot.slane %v349_v36, 4  ;;  %v358_v49 = vshll.u32 %v2608_v31, 16  ;;  %v2644_v20 = vld [vmem:[%s2466_s13 + $0x30] sm:$0xf] }
  0x3e   : > { %v1824_v51 = vcombine.low %v337_v37, %v347_v46  ;;  %v548_v53 = vrot.slane %v547_v39, 4  ;;  %v557_v54 = vor.u32 %v556_v40, %v552_v33  ;;  %v354_v55 = vrot.slane %v352_v42, 5  ;;  %v2656_v36 = vld [vmem:[%s2466_s13 + $0x34] sm:$0xf]  ;;  %v2661_v42 = vld [vmem:[%s2466_s13 + $0x38] sm:$0x1] }
  0x3f   : > { %v360_v56 = vrot.slane %v358_v49, 5  ;;  %v362_v57 = vshrl.u32 %v2608_v31, 16  ;;  %v368_v58 = vshll.u32 %v2617_v41, 16  ;;  %v565_v61 = vshrl.u32 %v2621_v45, 16 }
  0x40   : > { %v2633_v62 = vsel %vm715_vm3, %v1824_v51, 0  ;;  %v553_v63 = vsel %vm2506_vm2, %v548_v53, %v552_v33  ;;  %v558_v4 = vrot.slane %v557_v54, 4  ;;  %v355_v6 = vor.u32 %v354_v55, %v351_v48 }
  0x41   : > { %3516 = vst [vmem:[#allocation11_spill] sm:$0xff] %v2633_v62  ;;  %1988 = vmatpush3.bf16.xpose.msra.mxu0 %v2633_v62  ;;  %1916 = vmatpush3.bf16.xpose.msra.mxu1 %v2545_v14  ;;  %v364_v9 = vrot.slane %v362_v57, 4  ;;  %v370_v15 = vrot.slane %v368_v58, 5  ;;  %v567_v18 = vrot.slane %v565_v61, 4  ;;  %v568_v19 = vshll.u32 %v2621_v45, 16 }
  0x42   : > { %v563_v21 = vsel %vm2506_vm2, %v558_v4, %v562_v47  ;;  %v356_v28 = vrot.slane %v355_v6, 4  ;;  %2109 = vmatprep.subr.msk.bf16.mxu1 %vm715_vm3, %v2602_v27  ;;  %v574_v29 = vshll.u32 %v2629_v59, 16  ;;  %v578_v30 = vshrl.u32 %v2629_v59, 16  ;;  %v2670_v57 = vld [vmem:[%s2466_s13 + $0x9c] sm:$0xf] }
  0x43   : > { %v2652_v14 = vcombine.low %v553_v63, %v563_v21  ;;  %v365_v32 = vor.u32 %v364_v9, %v360_v56  ;;  %v570_v33 = vrot.slane %v568_v19, 5  ;;  %v584_v35 = vshll.u32 %v2638_v7, 16  ;;  %v2676_v21 = vld [vmem:[%s2466_s13 + $0xa0] sm:$0xf] }
  0x44   : > { %v361_v37 = vsel %vm2506_vm2, %v356_v28, %v360_v56  ;;  %v576_v39 = vrot.slane %v574_v29, 5  ;;  %v580_v40 = vrot.slane %v578_v30, 4  ;;  %v373_v46 = vshrl.u32 %v2644_v20, 16 }
  0x45   : > { %3517 = vst [vmem:[#allocation12_spill] sm:$0xff] %v2652_v14  ;;  %2141 = vmatprep.subr.msk.bf16.mxu0 %vm715_vm3, %v2652_v14  ;;  %v366_v47 = vrot.slane %v365_v32, 4  ;;  %v571_v48 = vor.u32 %v570_v33, %v567_v18  ;;  %v586_v49 = vrot.slane %v584_v35, 5  ;;  %v376_v51 = vshll.u32 %v2644_v20, 16  ;;  %v2682_v32 = vld [vmem:[%s2466_s13 + $0xa4] sm:$0x1] }
  0x46   : > { %v581_v53 = vor.u32 %v580_v40, %v576_v39  ;;  %v375_v54 = vrot.slane %v373_v46, 4  ;;  %v382_v55 = vshll.u32 %v2656_v36, 16  ;;  %v386_v56 = vshrl.u32 %v2656_v36, 16  ;;  %v2694_v40 = vld [vmem:[%s2466_s13 + $0x3c] sm:$0xf] }
  0x47   : > { %v371_v58 = vsel %vm2506_vm2, %v366_v47, %v370_v15  ;;  %v572_v61 = vrot.slane %v571_v48, 4  ;;  %v378_v63 = vrot.slane %v376_v51, 5  ;;  %v392_v4 = vshll.u32 %v2661_v42, 16 }
  0x48   : > { %v1825_v6 = vcombine.low %v361_v37, %v371_v58  ;;  %v582_v9 = vrot.slane %v581_v53, 4  ;;  %v384_v18 = vrot.slane %v382_v55, 5  ;;  %v388_v19 = vrot.slane %v386_v56, 4  ;;  %v2703_v56 = vld [vmem:[%s2466_s13 + $0x40] sm:$0xf] }
  0x49   : > { %1918 = vmatpush3.bf16.xpose.msra.mxu1 %v2633_v62  ;;  %v577_v28 = vsel %vm2506_vm2, %v572_v61, %v576_v39  ;;  %v379_v29 = vor.u32 %v378_v63, %v375_v54  ;;  %v394_v30 = vrot.slane %v392_v4, 5  ;;  %v589_v15 = vshrl.u32 %v2670_v57, 16  ;;  %v2710_v63 = vld [vmem:[%s2466_s13 + $0x44] sm:$0x1]  ;;  %v2723_v62 = vld [vmem:[%s2466_s13 + $0xac] sm:$0xf] }
  0x4a   : > { %v2686_v33 = vsel %vm715_vm3, %v1825_v6, 0  ;;  %v587_v35 = vsel %vm2506_vm2, %v582_v9, %v586_v49  ;;  %v389_v37 = vor.u32 %v388_v19, %v384_v18  ;;  %2110 = vmatprep.subr.msk.bf16.mxu1 %vm715_vm3, %v2652_v14  ;;  %v592_v39 = vshll.u32 %v2670_v57, 16 }
  0x4b   : > { %3518 = vst [vmem:[#allocation13_spill] sm:$0xff] %v2686_v33  ;;  %1990 = vmatpush3.bf16.xpose.msra.mxu0 %v2686_v33  ;;  %v2697_v46 = vcombine.low %v577_v28, %v587_v35  ;;  %v380_v47 = vrot.slane %v379_v29, 4  ;;  %v591_v48 = vrot.slane %v589_v15, 4  ;;  %v598_v51 = vshll.u32 %v2676_v21, 16  ;;  %v2717_v15 = vld [vmem:[%s2466_s13 + $0xa8] sm:$0xf] }
  0x4c   : > { %v390_v53 = vrot.slane %v389_v37, 4  ;;  %v594_v49 = vrot.slane %v592_v39, 5  ;;  %v602_v54 = vshrl.u32 %v2676_v21, 16  ;;  %v608_v55 = vshll.u32 %v2682_v32, 16 }
  0x4d   : > { %3519 = vst [vmem:[#allocation14_spill] sm:$0xff] %v2697_v46  ;;  %2142 = vmatprep.subr.msk.bf16.mxu0 %vm715_vm3, %v2697_v46  ;;  %v385_v58 = vsel %vm2506_vm2, %v380_v47, %v384_v18  ;;  %v600_v61 = vrot.slane %v598_v51, 5  ;;  %v397_v4 = vshrl.u32 %v2694_v40, 16  ;;  %v400_v6 = vshll.u32 %v2694_v40, 16 }
  0x4e   : > { %v395_v9 = vsel %vm2506_vm2, %v390_v53, %v394_v30  ;;  %v595_v19 = vor.u32 %v594_v49, %v591_v48  ;;  %v604_v28 = vrot.slane %v602_v54, 4  ;;  %v610_v29 = vrot.slane %v608_v55, 5  ;;  %v2730_v49 = vld [vmem:[%s2466_s13 + $0xb0] sm:$0x1] }
  0x4f   : > { %v1826_v35 = vcombine.low %v385_v58, %v395_v9  ;;  %v399_v37 = vrot.slane %v397_v4, 4  ;;  %v402_v18 = vrot.slane %v400_v6, 5  ;;  %v406_v39 = vshll.u32 %v2703_v56, 16  ;;  %3521 = vst [vmem:[#allocation16_spill] sm:$0xff] %v2730_v49 }
  0x50   : > { %v596_v47 = vrot.slane %v595_v19, 4  ;;  %v605_v51 = vor.u32 %v604_v28, %v600_v61  ;;  %v410_v44 = vshrl.u32 %v2703_v56, 16  ;;  %v416_v14 = vshll.u32 %v2710_v63, 16 }
  0x51   : > { %v2726_v30 = vsel %vm715_vm3, %v1826_v35, 0  ;;  %1920 = vmatpush3.bf16.xpose.msra.mxu1 %v2686_v33  ;;  %v403_v48 = vor.u32 %v402_v18, %v399_v37  ;;  %v408_v53 = vrot.slane %v406_v39, 5  ;;  %v613_v54 = vshrl.u32 %v2717_v15, 16  ;;  %v2741_v37 = vld [vmem:[%s2466_s13 + $0x48] sm:$0xf] }
  0x52   : > { %3520 = vst [vmem:[#allocation15_spill] sm:$0xff] %v2726_v30  ;;  %v601_v55 = vsel %vm2506_vm2, %v596_v47, %v600_v61  ;;  %v606_v58 = vrot.slane %v605_v51, 4  ;;  %v412_v4 = vrot.slane %v410_v44, 4  ;;  %v418_v6 = vrot.slane %v416_v14, 5  ;;  %2111 = vmatprep.subr.msk.bf16.mxu1 %vm715_vm3, %v2697_v46  ;;  %3522 = vst [vmem:[#allocation17_spill] sm:$0xff] %v2741_v37 }
  0x53   : > { %1992 = vmatpush3.bf16.xpose.msra.mxu0 %v2726_v30  ;;  %v404_v9 = vrot.slane %v403_v48, 4  ;;  %v615_v19 = vrot.slane %v613_v54, 4  ;;  %v616_v28 = vshll.u32 %v2717_v15, 16  ;;  %v622_v35 = vshll.u32 %v2723_v62, 16  ;;  %v2748_v39 = vld [vmem:[%s2466_s13 + $0x4c] sm:$0xf] }
  0x54   : > { %v611_v61 = vsel %vm2506_vm2, %v606_v58, %v610_v29  ;;  %v413_v18 = vor.u32 %v412_v4, %v408_v53  ;;  %v626_v44 = vshrl.u32 %v2723_v62, 16  ;;  %v632_v14 = vshll.u32 %v2730_v49, 16  ;;  %3523 = vst [vmem:[#allocation18_spill] sm:$0xff] %v2748_v39  ;;  %v2755_v46 = vld [vmem:[%s2466_s13 + $0x50] sm:$0x1] }
  0x55   : > { %v2750_v47 = vcombine.low %v601_v55, %v611_v61  ;;  %v409_v51 = vsel %vm2506_vm2, %v404_v9, %v408_v53  ;;  %v618_v48 = vrot.slane %v616_v28, 5  ;;  %v624_v54 = vrot.slane %v622_v35, 5  ;;  %v2765_v28 = vld [vmem:[%s2466_s13 + $0xb4] sm:$0xf] }
  0x56   : > { %v414_v33 = vrot.slane %v413_v18, 4  ;;  %v628_v27 = vrot.slane %v626_v44, 4  ;;  %v634_v29 = vrot.slane %v632_v14, 5  ;;  %v421_v58 = vshrl.u32 %v2741_v37, 16 }
  0x57   : > { %3524 = vst [vmem:[#allocation19_spill] sm:$0xff] %v2750_v47  ;;  %2143 = vmatprep.subr.msk.bf16.mxu0 %vm715_vm3, %v2750_v47  ;;  %v619_v55 = vor.u32 %v618_v48, %v615_v19  ;;  %v424_v4 = vshll.u32 %v2741_v37, 16  ;;  %v430_v53 = vshll.u32 %v2748_v39, 16  ;;  %v434_v9 = vshrl.u32 %v2748_v39, 16 }
  0x58   : > { %v419_v35 = vsel %vm2506_vm2, %v414_v33, %v418_v6  ;;  %v629_v61 = vor.u32 %v628_v27, %v624_v54  ;;  %v423_v18 = vrot.slane %v421_v58, 4  ;;  %v440_v44 = vshll.u32 %v2755_v46, 16  ;;  %v2784_v58 = vld [vmem:[%s2466_s13 + $0xbc] sm:$0x1] }
  0x59   : > { %v1827_v14 = vcombine.low %v409_v51, %v419_v35  ;;  %1922 = vmatpush3.bf16.xpose.msra.mxu1 %v2726_v30  ;;  %v620_v19 = vrot.slane %v619_v55, 4  ;;  %v426_v48 = vrot.slane %v424_v4, 5  ;;  %v432_v43 = vrot.slane %v430_v53, 5  ;;  %3526 = vst [vmem:[#allocation21_spill] sm:$0xff] %v2784_v58  ;;  %v2788_v4 = vld [vmem:[%s2466_s13 + $0x54] sm:$0xf] }
  0x5a   : > { %v630_v39 = vrot.slane %v629_v61, 4  ;;  %v436_v37 = vrot.slane %v434_v9, 4  ;;  %v442_v49 = vrot.slane %v440_v44, 5  ;;  %2112 = vmatprep.subr.msk.bf16.mxu1 %vm715_vm3, %v2750_v47  ;;  %v637_v27 = vshrl.u32 %v2765_v28, 16  ;;  %3527 = vst [vmem:[#allocation22_spill] sm:$0xff] %v2788_v4 }
  0x5b   : > { %v2779_v33 = vsel %vm715_vm3, %v1827_v14, 0  ;;  %v625_v6 = vsel %vm2506_vm2, %v620_v19, %v624_v54  ;;  %v427_v51 = vor.u32 %v426_v48, %v423_v18  ;;  %v640_v55 = vshll.u32 %v2765_v28, 16  ;;  %v2798_v14 = vld [vmem:[%s2466_s13 + $0x58] sm:$0xf] }
  0x5c   : > { %3525 = vst [vmem:[#allocation20_spill] sm:$0xff] %v2779_v33  ;;  %1994 = vmatpush3.bf16.xpose.msra.mxu0 %v2779_v33  ;;  %v635_v53 = vsel %vm2506_vm2, %v630_v39, %v634_v29  ;;  %v437_v0 = vor.u32 %v436_v37, %v432_v43  ;;  %v639_v9 = vrot.slane %v637_v27, 4  ;;  %v646_v35 = vshll.u32 %v2772_v52, 16  ;;  %3529 = vst [vmem:[#allocation24_spill] sm:$0xff] %v2798_v14 }
  0x5d   : > { %v2794_v61 = vcombine.low %v625_v6, %v635_v53  ;;  %v428_v54 = vrot.slane %v427_v51, 4  ;;  %v642_v18 = vrot.slane %v640_v55, 5  ;;  %v650_v44 = vshrl.u32 %v2772_v52, 16  ;;  %v2807_v6 = vld [vmem:[%s2466_s13 + $0x5c] sm:$0x1] }
  0x5e   : > { %v438_v19 = vrot.slane %v437_v0, 4  ;;  %v648_v48 = vrot.slane %v646_v35, 5  ;;  %v656_v47 = vshll.u32 %v2784_v58, 16  ;;  %v445_v39 = vshrl.u32 %v2788_v4, 16  ;;  %3530 = vst [vmem:[#allocation25_spill] sm:$0xff] %v2807_v6 }
  0x5f   : > { %3528 = vst [vmem:[#allocation23_spill] sm:$0xff] %v2794_v61  ;;  %2144 = vmatprep.subr.msk.bf16.mxu0 %vm715_vm3, %v2794_v61  ;;  %v433_v37 = vsel %vm2506_vm2, %v428_v54, %v432_v43  ;;  %v643_v29 = vor.u32 %v642_v18, %v639_v9  ;;  %v652_v27 = vrot.slane %v650_v44, 4  ;;  %v448_v51 = vshll.u32 %v2788_v4, 16  ;;  %v2811_v55 = vld [vmem:[%s2466_s13 + $0xc0] sm:$0xf] }
  0x60   : > { %v443_v53 = vsel %vm2506_vm2, %v438_v19, %v442_v49  ;;  %v658_v0 = vrot.slane %v656_v47, 5  ;;  %v447_v35 = vrot.slane %v445_v39, 4  ;;  %v454_v30 = vshll.u32 %v2798_v14, 16  ;;  %v2822_v49 = vld [vmem:[%s2466_s13 + $0xc4] sm:$0xf] }
  0x61   : > { %v1828_v58 = vcombine.low %v433_v37, %v443_v53  ;;  %1924 = vmatpush3.bf16.xpose.msra.mxu1 %v2779_v33  ;;  %v644_v43 = vrot.slane %v643_v29, 4  ;;  %v653_v9 = vor.u32 %v652_v27, %v648_v48  ;;  %v450_v54 = vrot.slane %v448_v51, 5 }
  0x62   : > { %v456_v18 = vrot.slane %v454_v30, 5  ;;  %v458_v44 = vshrl.u32 %v2798_v14, 16  ;;  %v464_v4 = vshll.u32 %v2807_v6, 16  ;;  %2113 = vmatprep.subr.msk.bf16.mxu1 %vm715_vm3, %v2794_v61  ;;  %v1324_v47 = vshrl.u32 %v2811_v55, 16  ;;  %v2831_v30 = vld [vmem:[%s2466_s13 + $0xc8] sm:$0x1] }
  0x63   : > { %v2826_v19 = vsel %vm715_vm3, %v1828_v58, 0  ;;  %v649_v39 = vsel %vm2506_vm2, %v644_v43, %v648_v48  ;;  %v654_v37 = vrot.slane %v653_v9, 4  ;;  %v451_v29 = vor.u32 %v450_v54, %v447_v35 }
  0x64   : > { %1996 = vmatpush3.bf16.xpose.msra.mxu0 %v2826_v19  ;;  %v460_v27 = vrot.slane %v458_v44, 4  ;;  %v466_v51 = vrot.slane %v464_v4, 5  ;;  %v1326_v53 = vrot.slane %v1324_v47, 4  ;;  %v1327_v61 = vshll.u32 %v2811_v55, 16 }
  0x65   : > { %v659_v33 = vsel %vm2506_vm2, %v654_v37, %v658_v0  ;;  %v452_v6 = vrot.slane %v451_v29, 4  ;;  %v1333_v58 = vshll.u32 %v2822_v49, 16  ;;  %v1337_v14 = vshrl.u32 %v2822_v49, 16 }
  0x66   : > { %v2839_v48 = vcombine.low %v649_v39, %v659_v33  ;;  %v461_v35 = vor.u32 %v460_v27, %v456_v18  ;;  %v1329_v43 = vrot.slane %v1327_v61, 5  ;;  %v1343_v9 = vshll.u32 %v2831_v30, 16 }
  0x67   : > { %v1335_v54 = vrot.slane %v1333_v58, 5  ;;  %v1339_v44 = vrot.slane %v1337_v14, 4  ;;  %v457_v4 = vsel %vm2506_vm2, %v452_v6, %v456_v18  ;;  %v1068_v33 = vrot.slane %v2473_v2, 5 }
  0x68   : > { %2145 = vmatprep.subr.msk.bf16.mxu0 %vm715_vm3, %v2839_v48  ;;  %v462_v0 = vrot.slane %v461_v35, 4  ;;  %v1330_v47 = vor.u32 %v1329_v43, %v1326_v53  ;;  %v1345_v29 = vrot.slane %v1343_v9, 5  ;;  %v1012_v6 = vrot.slane %v2487_v10, 5 }
  0x69   : > { %1926 = vmatpush3.bf16.xpose.msra.mxu1 %v2826_v19  ;;  %v1340_v37 = vor.u32 %v1339_v44, %v1335_v54  ;;  %v1071_v18 = vrot.slane %v2476_v3, 5  ;;  %v1865_v2 = vrot.slane %v2470_v1, 9  ;;  %v1070_v58 = vrot.slane %v1068_v33, 4 }
  0x6a   : > { %v467_v61 = vsel %vm2506_vm2, %v462_v0, %v466_v51  ;;  %v1331_v39 = vrot.slane %v1330_v47, 4  ;;  %2114 = vmatprep.subr.msk.bf16.mxu1 %vm715_vm3, %v2839_v48  ;;  %v1857_v3 = vrot.slane %v2483_v8, 9  ;;  %v2872_v1 = vcombine.low %v2499_v24, %v2502_v25 }
  0x6b   : > { %v1829_v14 = vcombine.low %v457_v4, %v467_v61  ;;  %v1341_v27 = vrot.slane %v1340_v37, 4  ;;  %v1015_v9 = vrot.slane %v2490_v11, 5  ;;  %v1069_v44 = vsel %vm2862_vm6, %v1865_v2, %v1068_v33 }
  0x6c   : > { %v1336_v53 = vsel %vm2506_vm2, %v1331_v39, %v1335_v54  ;;  %v1014_v54 = vrot.slane %v1012_v6, 4  ;;  %v1072_v4 = vsel %vm2862_vm6, %v1070_v58, %v1071_v18  ;;  %v1867_v8 = vrot.slane %v2579_v50, 9  ;;  %v3541_v18 = vld [vmem:[#allocation24_spill] sm:$0xff] }
  0x6d   : > { %v2858_v51 = vsel %vm715_vm3, %v1829_v14, 0  ;;  %v1346_v35 = vsel %vm2506_vm2, %v1341_v27, %v1345_v29  ;;  %v2885_v24 = vsel %vm715_vm3, %v2558_v23, 0  ;;  %v2889_v11 = vsel %vm2862_vm6, %v1857_v3, %v1012_v6 }
  0x6e   : > { %3531 = vst [vmem:[#allocation26_spill] sm:$0xff] %v2858_v51  ;;  %1998 = vmatpush3.bf16.xpose.msra.mxu0 %v2858_v51  ;;  %v2867_v10 = vcombine.low %v1336_v53, %v1346_v35  ;;  %3535 = vst [vmem:[#allocation28_spill] sm:$0xff] %v2885_v24  ;;  %v1082_v25 = vrot.slane %v2586_v60, 5  ;;  %v1085_v0 = vrot.slane %v2593_v12, 5  ;;  %v2895_v47 = vcombine.low %v1069_v44, %v1072_v4 }
  0x6f   : > { %v2899_v37 = vsel %vm2862_vm6, %v1014_v54, %v1015_v9  ;;  %v1859_v23 = vrot.slane %v2597_v16, 9  ;;  %v1026_v29 = vrot.slane %v2608_v31, 5  ;;  %v1029_v39 = vrot.slane %v2617_v41, 5 }
  0x70   : > { %3534 = vst [vmem:[#allocation27_spill] sm:$0xff] %v2867_v10  ;;  %2146 = vmatprep.subr.msk.bf16.mxu0 %vm715_vm3, %v2867_v10  ;;  %v1083_v33 = vsel %vm2862_vm6, %v1867_v8, %v1082_v25  ;;  %v1084_v61 = vrot.slane %v1082_v25, 4  ;;  %v1866_v14 = vrot.slane %v2538_v5, 9  ;;  %v1075_v12 = vrot.slane %v2542_v13, 5  ;;  %v3543_v10 = vld [vmem:[#allocation9_spill] sm:$0xff] }
  0x71   : > { %1928 = vmatpush3.bf16.xpose.msra.mxu1 %v2858_v51  ;;  %v2910_v27 = vsel %vm2862_vm6, %v1859_v23, %v1026_v29  ;;  %v1028_v6 = vrot.slane %v1026_v29, 4  ;;  %v1868_v2 = vrot.slane %v2621_v45, 9  ;;  %v1089_v41 = vrot.slane %v2629_v59, 5 }
  0x72   : > { %2115 = vmatprep.subr.msk.bf16.mxu1 %vm715_vm3, %v2872_v1  ;;  %v1086_v53 = vsel %vm2862_vm6, %v1084_v61, %v1085_v0  ;;  %v1078_v58 = vrot.slane %v2550_v17, 5  ;;  %v1092_v9 = vrot.slane %v2638_v7, 5  ;;  %v1860_v8 = vrot.slane %v2644_v20, 9 }
  0x73   : > { %v2922_v35 = vcombine.low %v1083_v33, %v1086_v53  ;;  %v2926_v3 = vsel %vm2862_vm6, %v1028_v6, %v1029_v39  ;;  %v1090_v44 = vsel %vm2862_vm6, %v1868_v2, %v1089_v41  ;;  %v1091_v4 = vrot.slane %v1089_v41, 4 }
  0x74   : > { %v1033_v17 = vrot.slane %v2656_v36, 5  ;;  %v1036_v0 = vrot.slane %v2661_v42, 5  ;;  %v3502_v7 = vrot.slane %v2566_v34, 5  ;;  %v1869_v33 = vrot.slane %v2670_v57, 9 }
  0x75   : > { %v1093_v29 = vsel %vm2862_vm6, %v1091_v4, %v1092_v9  ;;  %v1096_v61 = vrot.slane %v2676_v21, 5  ;;  %v1076_v39 = vsel %vm2862_vm6, %v1866_v14, %v1075_v12  ;;  %v1099_v9 = vrot.slane %v2682_v32, 5 }
  0x76   : > { %2000 = vmatpush3.bf16.xpose.msra.mxu0 %v2885_v24  ;;  %v2946_v6 = vcombine.low %v1090_v44, %v1093_v29  ;;  %v2950_v42 = vsel %vm2862_vm6, %v1860_v8, %v1033_v17  ;;  %v1035_v53 = vrot.slane %v1033_v17, 4  ;;  %v1861_v4 = vrot.slane %v2694_v40, 9  ;;  %v3536_v17 = vld [vmem:[#allocation16_spill] sm:$0xff] }
  0x77   : > { %2147 = vmatprep.subr.msk.bf16.mxu0 %vm715_vm3, %v2895_v47  ;;  %v1097_v2 = vsel %vm2862_vm6, %v1869_v33, %v1096_v61  ;;  %v1098_v41 = vrot.slane %v1096_v61, 4  ;;  %v1040_v14 = vrot.slane %v2703_v56, 5  ;;  %v1043_v44 = vrot.slane %v2710_v63, 5 }
  0x78   : > { %v2958_v23 = vsel %vm2862_vm6, %v1035_v53, %v1036_v0  ;;  %v2964_v8 = vcombine.low %v2621_v45, %v2629_v59  ;;  %v1870_v0 = vrot.slane %v2717_v15, 9  ;;  %v1103_v45 = vrot.slane %v2723_v62, 5 }
  0x79   : > { %v1100_v32 = vsel %vm2862_vm6, %v1098_v41, %v1099_v9  ;;  %v2977_v63 = vsel %vm2862_vm6, %v1861_v4, %v1040_v14  ;;  %v1042_v61 = vrot.slane %v1040_v14, 4  ;;  %v1077_v59 = vrot.slane %v1075_v12, 4  ;;  %v3537_v41 = vld [vmem:[#allocation17_spill] sm:$0xff]  ;;  %v3538_v4 = vld [vmem:[#allocation18_spill] sm:$0xff] }
  0x7a   : > { %v2973_v33 = vcombine.low %v1097_v2, %v1100_v32  ;;  %v1022_v53 = vrot.slane %v2571_v38, 5  ;;  %v1106_v54 = vrot.slane %v3536_v17, 5  ;;  %v1862_v9 = vrot.slane %v3537_v41, 9  ;;  %v3540_v14 = vld [vmem:[#allocation22_spill] sm:$0xff] }
  0x7b   : > { %v2985_v29 = vsel %vm2862_vm6, %v1042_v61, %v1043_v44  ;;  %v1104_v2 = vsel %vm2862_vm6, %v1870_v0, %v1103_v45  ;;  %v1105_v32 = vrot.slane %v1103_v45, 4  ;;  %v1047_v25 = vrot.slane %v3538_v4, 5 }
  0x7c   : > { %v1050_v12 = vrot.slane %v2755_v46, 5  ;;  %v2995_v38 = vcombine.low %v2670_v57, %v2676_v21  ;;  %v1871_v45 = vrot.slane %v2765_v28, 9  ;;  %v1079_v46 = vsel %vm2862_vm6, %v1077_v59, %v1078_v58  ;;  %v3544_v58 = vld [vmem:[#allocation7_spill] sm:$0xff] }
  0x7d   : > { %v1107_v44 = vsel %vm2862_vm6, %v1105_v32, %v1106_v54  ;;  %v3003_v0 = vsel %vm2862_vm6, %v1862_v9, %v1047_v25  ;;  %v1049_v61 = vrot.slane %v1047_v25, 4  ;;  %v1021_v57 = vrot.slane %v3502_v7, 4  ;;  %v3539_v32 = vld [vmem:[#allocation21_spill] sm:$0xff] }
  0x7e   : > { %v3010_v21 = vcombine.low %v1104_v2, %v1107_v44  ;;  %v1110_v17 = vrot.slane %v2772_v52, 5  ;;  %v1113_v9 = vrot.slane %v3539_v32, 5  ;;  %v1863_v25 = vrot.slane %v3540_v14, 9  ;;  %v3542_v44 = vld [vmem:[#allocation25_spill] sm:$0xff] }
  0x7f   : > { %v3015_v54 = vsel %vm2862_vm6, %v1049_v61, %v1050_v12  ;;  %v1054_v24 = vrot.slane %v3541_v18, 5  ;;  %v1057_v7 = vrot.slane %v3542_v44, 5  ;;  %v3031_v61 = vcombine.low %v2717_v15, %v2723_v62 }
  0x80   : > { %v1111_v59 = vsel %vm2862_vm6, %v1871_v45, %v1110_v17  ;;  %v1112_v2 = vrot.slane %v1110_v17, 4  ;;  %v1845_v32 = vcombine.low %v3537_v41, %v3538_v4  ;;  %v1839_v51 = vcombine.low %v3544_v58, %v3543_v10  ;;  %v2277_v41 = vld [vmem:[%s2466_s13] sm:$0xf] }
  0x81   : > { %v3027_v26 = vsel %vm2862_vm6, %v1863_v25, %v1054_v24  ;;  %v1056_v12 = vrot.slane %v1054_v24, 4  ;;  %v1893_v45 = vrot.slane %v2811_v55, 9  ;;  %v1408_v44 = vrot.slane %v2822_v49, 5 }
  0x82   : > { %v1114_v17 = vsel %vm2862_vm6, %v1112_v2, %v1113_v9  ;;  %v3545_v24 = vcombine.low %v2889_v11, %v2899_v37  ;;  %v1411_v10 = vrot.slane %v2831_v30, 5  ;;  %v3054_v9 = vcombine.low %v1076_v39, %v1079_v46 }
  0x83   : > { %v3047_v62 = vcombine.low %v1111_v59, %v1114_v17  ;;  %v3051_v15 = vsel %vm2862_vm6, %v1056_v12, %v1057_v7  ;;  %v1409_v11 = vsel %vm2862_vm6, %v1893_v45, %v1408_v44  ;;  %v1410_v37 = vrot.slane %v1408_v44, 4 }
  0x84   : > { %v3045_v25 = vsel %vm715_vm3, %v3545_v24, 0  ;;  %v1879_v2 = vcombine.low %v3027_v26, %v3051_v15  ;;  %v3546_v59 = vrot.slane %v2566_v34, 5  ;;  %v3547_v17 = vrot.slane %v2556_v22, 9  ;;  %v2267_v24 = vld [vmem:[%s2466_s13 + $0x6c] sm:$0xf] }
  0x85   : > { %v1023_v7 = vsel %vm2862_vm6, %v1021_v57, %v1022_v53  ;;  %v3071_v39 = vcombine.low %v2765_v28, %v2772_v52  ;;  %v1846_v46 = vcombine.low %v3540_v14, %v3541_v18  ;;  %v1412_v45 = vsel %vm2862_vm6, %v1410_v37, %v1411_v10  ;;  %v2268_v10 = vld [vmem:[%s2466_s13 + $0x70] sm:$0xf] }
  0x86   : > { %v1020_v30 = vsel %vm2862_vm6, %v3547_v17, %v3546_v59  ;;  %v3082_v44 = vcombine.low %v2811_v55, %v2822_v49  ;;  %v3085_v53 = vcombine.low %v1409_v11, %v1412_v45  ;;  %v894_v28 = vsel %vm715_vm3, %v1839_v51, 0  ;;  %v3101_v49 = vld [vmem:[%s3474_s1] sm:$0xff]   ;;  %v2271_v11 = vld [vmem:[%s2466_s13 + $0x10] sm:$0xf] }
  0x87   : > { %v1874_v57 = vcombine.low %v1020_v30, %v1023_v7  ;;  %v3094_v55 = vcombine.low %v2267_v24, %v2268_v10  ;;  %v3120_v17 = vcombine.low %v2538_v5, %v2542_v13  ;;  %1621 = vrot.lane.b32.xlu1 %v3101_v49, %s2365_s27  ;;  %v3548_v30 = vcombine.low %v2910_v27, %v2926_v3  ;;  %s2284_s27 = scalar_lea.vmem %s2283_s25, 512 }
  0x88   : > { %v1841_v45 = vcombine.low %v2556_v22, %v2566_v34  ;;  %v3142_v13 = vcombine.low %v2579_v50, %v2586_v60  ;;  %v3549_v27 = vcombine.low %v2950_v42, %v2958_v23  ;;  %v3550_v34 = vcombine.low %v2597_v16, %v2608_v31 }
  0x89   : > { %v3106_v51 = vsel %vm715_vm3, %v1874_v57, 0  ;;  %v3128_v7 = vsel %vm715_vm3, %v3548_v30, 0  ;;  %v3551_v60 = vcombine.low %v2977_v63, %v2985_v29  ;;  %v3552_v16 = vcombine.low %v2644_v20, %v2656_v36  ;;  %v2272_v29 = vld [vmem:[%s2466_s13 + $0x64] sm:$0xf] }
  0x8a   : > { %v3136_v5 = vsel %vm715_vm3, %v1841_v45, 0  ;;  %v3149_v22 = vsel %vm715_vm3, %v3549_v27, 0  ;;  %v3158_v50 = vsel %vm715_vm3, %v3550_v34, 0  ;;  %v3553_v23 = vcombine.low %v3003_v0, %v3015_v54  ;;  %v2273_v0 = vld [vmem:[%s2466_s13 + $0x68] sm:$0x1] }
  0x8b   : > { %v1348_v58 = vpop.permute.xlu0 %1347  ;;  %v3167_v3 = vsel %vm715_vm3, %v3551_v60, 0  ;;  %v3176_v31 = vsel %vm715_vm3, %v3552_v16, 0  ;;  %v1061_v63 = vrot.slane %v2272_v29, 5  ;;  %v3554_v20 = vcombine.low %v2694_v40, %v2703_v56  ;;  %v1679_v29 = vld [vmem:[%s3475_s2] sm:$0xff] }
  0x8c   : > { %2001 = vmatprep.mubr.msk.bf16.mxu0 %vm715_vm3, %v1348_v58  ;;  %v3075_v12 = vpop.permute.xlu1 %1413  ;;  %v3185_v42 = vsel %vm715_vm3, %v3553_v23, 0  ;;  %v1064_v54 = vrot.slane %v2273_v0, 5  ;;  %v3206_v40 = vsel %vm715_vm3, %v1879_v2, 0  ;;  %v3219_v26 = vsel %vm715_vm3, %v1845_v32, 0  ;;  %v2275_v2 = vld [vmem:[%s2466_s13 + $0x4] sm:$0xf] }
  0x8d   : > { %2002 = vmatmul.mubr.msk.bf16.vlgmr.msra.gmra.mrb[0].mxu0 %vm715_vm3, %v1348_v58  ;;  %v2270_v58 = vld [vmem:[%s2466_s13 + $0xc] sm:$0xf]  ;;  %v3195_v36 = vsel %vm715_vm3, %v3554_v20, 0  ;;  %v1063_v57 = vrot.slane %v1061_v63, 4  ;;  %v1005_v10 = vrot.slane %v2275_v2, 5  ;;  %v1856_v4 = vrot.slane %v2277_v41, 9 }
  0x8e   : > { %2004 = vmatpush3.bf16.xpose.msra.mxu0 %v3045_v25  ;;  %2019 = vmatprep.mubr.msk.bf16.mxu0 %vm715_vm3, %v3075_v12  ;;  %v1840_v37 = vcombine.low %v2270_v58, %v2271_v11  ;;  %v2276_v11 = vld [vmem:[%s2466_s13 + $0x8] sm:$0x1]  ;;  %v3237_v30 = vsel %vm715_vm3, %v1846_v46, 0  ;;  %v3290_v46 = vld [vmem:[%s2466_s13 + $0xd0] sm:$0xf]  ;;  %v921_v16 = vsel %vm715_vm3, %v3094_v55, 0 }
  0x8f   : > { %v666_v52 = vpop.permute.xlu0 %665  ;;  %2148 = vmatprep.subr.msk.bf16.mxu0 %vm715_vm3, %v3054_v9  ;;  %v1065_v24 = vsel %vm2862_vm6, %v1063_v57, %v1064_v54  ;;  %v1007_v32 = vrot.slane %v1005_v10, 4  ;;  %v1006_v45 = vsel %vm2862_vm6, %v1856_v4, %v1005_v10  ;;  %v1680_v20 = vld [vmem:[%s3475_s2 + $0x8] sm:$0xff]  ;;  %v3557_v0 = vld [vmem:[#allocation12_spill] sm:$0xff]  ;;  %v2366_v54 = vmov 0  }
  0x90   : > { %1929 = vmatprep.mubr.msk.bf16.mxu1 %vm715_vm3, %v666_v52  ;;  %v3114_v59 = vsel %vm715_vm3, %v1840_v37, 0  ;;  %v1008_v37 = vrot.slane %v2276_v11, 5  ;;  %v1472_v60 = vpop.permute.xlu1 %1471  ;;  %2246 = vset.pattern.permute.xlu0 %v2366_v54  ;;  %v3560_v57 = vld [vmem:[#allocation15_spill] sm:$0xff]  ;;  %v270_v11 = vld [vmem:[%s2466_s13 + $0xd4] sm:$0x1] }
  0x91   : > { %1930 = vmatmul.mubr.msk.bf16.vlgmr.msra.gmra.mrb[0].mxu1 %vm715_vm3, %v666_v52  ;;  %v2274_v52 = vld [vmem:[%s2466_s13 + $0x60] sm:$0xf]  ;;  %1683 = vperm.xlu0 %2246, %v1679_v29   ;;  %v1551_v4 = vshll.u32 %v270_v11, 16 }
  0x92   : > { %1932 = vmatpush3.bf16.xpose.msra.mxu1 %v894_v28  ;;  %1947 = vmatprep.mubr.msk.bf16.mxu1 %vm715_vm3, %v3101_v49  ;;  %v1864_v28 = vrot.slane %v2274_v52, 9  ;;  %v1009_v27 = vsel %vm2862_vm6, %v1007_v32, %v1008_v37  ;;  %v3558_v52 = vld [vmem:[#allocation13_spill] sm:$0xff] }
  0x93   : > { %2116 = vmatprep.subr.msk.bf16.mxu1 %vm715_vm3, %v3094_v55  ;;  %v1872_v34 = vcombine.low %v1006_v45, %v1009_v27  ;;  %v1116_v14 = vpop.permute.xlu0 %1115  ;;  %2247 = vset.pattern.permute.xlu1 %v2366_v54  ;;  %v1553_v32 = vrot.slane %v1551_v4, 5  ;;  %v3564_v45 = vld [vmem:[#allocation26_spill] sm:$0xff]  ;;  %v3565_v27 = vld [vmem:[#allocation27_spill] sm:$0xff] }
  0x94   : > { %v1062_v56 = vsel %vm2862_vm6, %v1864_v28, %v1061_v63  ;;  %v3313_v23 = vpop.permute.xlu1 %1555  ;;  %v3556_v63 = vld [vmem:[#allocation11_spill] sm:$0xff]  ;;  %1688 = vperm.xlu1 %2247, %v1680_v20   ;;  %v3559_v28 = vld [vmem:[#allocation14_spill] sm:$0xff] }
  0x95   : > { %v1880_v15 = vcombine.low %v1062_v56, %v1065_v24  ;;  %v1169_v18 = vsel %vm715_vm3, %v1872_v34, 0  ;;  %v3561_v56 = vld [vmem:[#allocation19_spill] sm:$0xff]  ;;  %v1545_v24 = vshrl.u32 %v3290_v46, 16 }
  0x96   : > { %2006 = vmatpush3.bf16.xpose.msra.mxu0 %v3106_v51 }
  0x97   : > { %2149 = vmatprep.subr.msk.bf16.mxu0 %vm715_vm3, %v2922_v35  ;;  %v3226_v58 = vsel %vm715_vm3, %v1880_v15, 0  ;;  %v1547_v10 = vrot.slane %v1545_v24, 4 }
  0x9a   : > { %1934 = vmatpush3.bf16.xpose.msra.mxu1 %v3114_v59 }
  0x9b   : > { %2117 = vmatprep.subr.msk.bf16.mxu1 %vm715_vm3, %v3120_v17 }
  0x9e   : > { %2008 = vmatpush3.bf16.xpose.msra.mxu0 %v3128_v7 }
  0x9f   : > { %2150 = vmatprep.subr.msk.bf16.mxu0 %vm715_vm3, %v2946_v6 }
  0xa2   : > { %1936 = vmatpush3.bf16.xpose.msra.mxu1 %v3136_v5 }
  0xa3   : > { %2118 = vmatprep.subr.msk.bf16.mxu1 %vm715_vm3, %v3142_v13 }
  0xa6   : > { %2010 = vmatpush3.bf16.xpose.msra.mxu0 %v3149_v22 }
  0xa7   : > { %2151 = vmatprep.subr.msk.bf16.mxu0 %vm715_vm3, %v2973_v33 }
  0xaa   : > { %1938 = vmatpush3.bf16.xpose.msra.mxu1 %v3158_v50 }
  0xab   : > { %2119 = vmatprep.subr.msk.bf16.mxu1 %vm715_vm3, %v2964_v8 }
  0xae   : > { %2012 = vmatpush3.bf16.xpose.msra.mxu0 %v3167_v3 }
  0xaf   : > { %2152 = vmatprep.subr.msk.bf16.mxu0 %vm715_vm3, %v3010_v21 }
  0xb2   : > { %1940 = vmatpush3.bf16.xpose.msra.mxu1 %v3176_v31 }
  0xb3   : > { %2120 = vmatprep.subr.msk.bf16.mxu1 %vm715_vm3, %v2995_v38 }
  0xb6   : > { %2014 = vmatpush3.bf16.xpose.msra.mxu0 %v3185_v42 }
  0xb7   : > { %2153 = vmatprep.subr.msk.bf16.mxu0 %vm715_vm3, %v3047_v62 }
  0xba   : > { %1942 = vmatpush3.bf16.xpose.msra.mxu1 %v3195_v36 }
  0xbb   : > { %2121 = vmatprep.subr.msk.bf16.mxu1 %vm715_vm3, %v3031_v61 }
  0xbe   : > { %2016 = vmatpush3.bf16.xpose.msra.mxu0 %v3206_v40 }
  0xbf   : > { %2154 = vmatprep.subr.msk.bf16.mxu0 %vm715_vm3, %v3085_v53 }
  0xc2   : > { %1944 = vmatpush3.bf16.xpose.msra.mxu1 %v3219_v26 }
  0xc3   : > { %2122 = vmatprep.subr.msk.bf16.mxu1 %vm715_vm3, %v3071_v39 }
  0xc6   : > { %2018 = vmatpush3.bf16.xpose.msra.mxu0 %v3226_v58 }
  0xc7   : > { %2155 = vmatprep.subr.msk.bf16.mxu0 %vm715_vm3, %v3120_v17 }
  0xca   : > { %1946 = vmatpush3.bf16.xpose.msra.mxu1 %v3237_v30 }
  0xcb   : > { %2123 = vmatprep.subr.msk.bf16.mxu1 %vm715_vm3, %v1880_v15  ;;  %v1541_v15 = vshll.u32 %v3290_v46, 16 }
  0xcd   : > { %2020 = vmatmul.mubr.msk.bf16.vlgmr.msra.gmra.mrb[0].mxu0 %vm715_vm3, %v3075_v12  ;;  %v3295_v12 = vsel %vm715_vm3, %v2872_v1, 0  ;;  %v3555_v1 = vld [vmem:[#allocation10_spill] sm:$0xff]  ;;  %v1543_v2 = vrot.slane %v1541_v15, 5 }
  0xce   : > { %2022 = vmatpush3.bf16.xpose.msra.mxu0 %v3136_v5  ;;  %2037 = vmatprep.mubr.msk.bf16.mxu0 %vm715_vm3, %v1472_v60 }
  0xcf   : > { %2156 = vmatprep.subr.msk.bf16.mxu0 %vm715_vm3, %v3142_v13  ;;  %v1548_v41 = vor.u32 %v1547_v10, %v1543_v2 }
  0xd1   : > { %1948 = vmatmul.mubr.msk.bf16.vlgmr.msra.gmra.mrb[0].mxu1 %vm715_vm3, %v3101_v49 }
  0xd2   : > { %1950 = vmatpush3.bf16.xpose.msra.mxu1 %v1169_v18  ;;  %1965 = vmatprep.mubr.msk.bf16.mxu1 %vm715_vm3, %v1116_v14 }
  0xd3   : > { %2124 = vmatprep.subr.msk.bf16.mxu1 %vm715_vm3, %v2895_v47 }
  0xd6   : > { %2024 = vmatpush3.bf16.xpose.msra.mxu0 %v3158_v50 }
  0xd7   : > { %2157 = vmatprep.subr.msk.bf16.mxu0 %vm715_vm3, %v2964_v8 }
  0xda   : > { %1952 = vmatpush3.bf16.xpose.msra.mxu1 %v3045_v25  ;;  %v3287_v25 = vld [vmem:[%s2466_s13 + $0xcc] sm:$0xf]  ;;  %s1739_s13 = sshll.u32 %s205_s12, 4  ;;  %s3423_s13 = int_to_ptr.vmem [resolvable:$true] %s1739_s13 }
  0xdb   : > { %2125 = vmatprep.subr.msk.bf16.mxu1 %vm715_vm3, %v3054_v9  ;;  %v1896_v49 = vcombine.low %v3287_v25, %v3290_v46  ;;  %s2278_s3 = scalar_lea.vmem %s3423_s13, 256  ;;  %p2285_p1 = scmp.lt.s32.totalorder %s3423_s13, %s2283_s25 }
  0xdc   : > { %p2279_p12 = scmp.ne.s32.totalorder %s3423_s13, %s2278_s3  ;;  %p2286_p2 = scmp.lt.s32.totalorder %s2284_s27, %s2278_s3 }
  0xde   : > { %2026 = vmatpush3.bf16.xpose.msra.mxu0 %v3176_v31  ;;  %p2280_p13 = pnand %p2279_p12, %p2438_p4  ;;  %p2287_p3 = por %p2286_p2, %p2285_p1 }
  0xdf   : > { %2158 = vmatprep.subr.msk.bf16.mxu0 %vm715_vm3, %v2995_v38 }
  0xe0   : > { %p2281_p0 = pneg %p2280_p13 }
  0xe2   : > { %1954 = vmatpush3.bf16.xpose.msra.mxu1 %v3106_v51  ;;  %p2288_p5 = pnand %p2287_p3, %p2281_p0 }
  0xe3   : > { %2126 = vmatprep.subr.msk.bf16.mxu1 %vm715_vm3, %v2922_v35 }
  0xe6   : > { %2028 = vmatpush3.bf16.xpose.msra.mxu0 %v3195_v36 }
  0xe7   : > { %2159 = vmatprep.subr.msk.bf16.mxu0 %vm715_vm3, %v3031_v61 }
  0xea   : > { %1956 = vmatpush3.bf16.xpose.msra.mxu1 %v3128_v7 }
  0xeb   : > { %2127 = vmatprep.subr.msk.bf16.mxu1 %vm715_vm3, %v2946_v6 }
  0xee   : > { %2030 = vmatpush3.bf16.xpose.msra.mxu0 %v3219_v26 }
  0xef   : > { %2160 = vmatprep.subr.msk.bf16.mxu0 %vm715_vm3, %v3071_v39 }
  0xf2   : > { %1958 = vmatpush3.bf16.xpose.msra.mxu1 %v3149_v22 }
  0xf3   : > { %2128 = vmatprep.subr.msk.bf16.mxu1 %vm715_vm3, %v2973_v33 }
  0xf6   : > { %2032 = vmatpush3.bf16.xpose.msra.mxu0 %v3237_v30 }
  0xf7   : > { %2161 = vmatprep.subr.msk.bf16.mxu0 %vm715_vm3, %v3082_v44 }
  0xfa   : > { %1960 = vmatpush3.bf16.xpose.msra.mxu1 %v3167_v3 }
  0xfb   : > { %2129 = vmatprep.subr.msk.bf16.mxu1 %vm715_vm3, %v3010_v21 }
  0xfe   : > { %2034 = vmatpush3.bf16.xpose.msra.mxu0 %v3295_v12 }
  0xff   : > { %2162 = vmatprep.subr.msk.bf16.mxu0 %vm715_vm3, %v1896_v49 }
 0x102   : > { %1962 = vmatpush3.bf16.xpose.msra.mxu1 %v3185_v42 }
 0x103   : > { %2130 = vmatprep.subr.msk.bf16.mxu1 %vm715_vm3, %v3047_v62 }
 0x106   : > { %2036 = vmatpush3.bf16.xpose.msra.mxu0 %v921_v16 }
 0x107   : > { %2163 = vmatprep.subr.msk.bf16.mxu0 %vm715_vm3, %v3555_v1 }
 0x10a   : > { %1964 = vmatpush3.bf16.xpose.msra.mxu1 %v3206_v40 }
 0x10b   : > { %2131 = vmatprep.subr.msk.bf16.mxu1 %vm715_vm3, %v3094_v55  ;;  %v1264_v55 = vpop.permute.xlu0 %1263 }
 0x10d   : > { %2038 = vmatmul.mubr.msk.bf16.vlgmr.msra.gmra.mrb[0].mxu0 %vm715_vm3, %v1472_v60  ;;  %v3568_v60 = vld [vmem:[#allocation8_spill] sm:$0xff] }
 0x10e   : > { %2040 = vmatpush3.bf16.xpose.msra.mxu0 %v3556_v63  ;;  %2055 = vmatprep.mubr.msk.bf16.mxu0 %vm715_vm3, %v3313_v23  ;;  %v747_v18 = vsel %vm715_vm3, %v3568_v60, 0 }
 0x10f   : > { %2164 = vmatprep.subr.msk.bf16.mxu0 %vm715_vm3, %v3557_v0 }
 0x111   : > { %1966 = vmatmul.mubr.msk.bf16.vlgmr.msra.gmra.mrb[0].mxu1 %vm715_vm3, %v1116_v14 }
 0x112   : > { %1968 = vmatpush3.bf16.xpose.msra.mxu1 %v3114_v59  ;;  %1983 = vmatprep.mubr.msk.bf16.mxu1 %vm715_vm3, %v1264_v55  ;;  %v3562_v59 = vld [vmem:[#allocation20_spill] sm:$0xff] }
 0x113   : > { %2132 = vmatprep.subr.msk.bf16.mxu1 %vm715_vm3, %v3120_v17  ;;  %v3563_v17 = vld [vmem:[#allocation23_spill] sm:$0xff] }
 0x116   : > { %2042 = vmatpush3.bf16.xpose.msra.mxu0 %v3558_v52 }
 0x117   : > { %2165 = vmatprep.subr.msk.bf16.mxu0 %vm715_vm3, %v3559_v28 }
 0x11a   : > { %1970 = vmatpush3.bf16.xpose.msra.mxu1 %v3136_v5  ;;  %v1532_v5 = vshrl.u32 %v3287_v25, 16 }
 0x11b   : > { %2133 = vmatprep.subr.msk.bf16.mxu1 %vm715_vm3, %v3142_v13  ;;  %v1535_v13 = vshll.u32 %v3287_v25, 16 }
 0x11e   : > { %2044 = vmatpush3.bf16.xpose.msra.mxu0 %v3560_v57 }
 0x11f   : > { %2166 = vmatprep.subr.msk.bf16.mxu0 %vm715_vm3, %v3561_v56 }
 0x122   : > { %1972 = vmatpush3.bf16.xpose.msra.mxu1 %v3158_v50  ;;  %v1534_v50 = vrot.slane %v1532_v5, 4 }
 0x123   : > { %2134 = vmatprep.subr.msk.bf16.mxu1 %vm715_vm3, %v2964_v8  ;;  %v1537_v8 = vrot.slane %v1535_v13, 5 }
 0x125   : > { %v1538_v37 = vor.u32 %v1537_v8, %v1534_v50 }
 0x126   : > { %2046 = vmatpush3.bf16.xpose.msra.mxu0 %v3562_v59 }
 0x127   : > { %2167 = vmatprep.subr.msk.bf16.mxu0 %vm715_vm3, %v3563_v17 }
 0x12a   : > { %1974 = vmatpush3.bf16.xpose.msra.mxu1 %v3176_v31  ;;  %v1539_v31 = vrot.slane %v1538_v37, 4 }
 0x12b   : > { %2135 = vmatprep.subr.msk.bf16.mxu1 %vm715_vm3, %v2995_v38  ;;  %v1549_v38 = vrot.slane %v1548_v41, 4 }
 0x12c   : > { %v1544_v34 = vsel %vm2506_vm2, %v1539_v31, %v1543_v2 }
 0x12e   : > { %2048 = vmatpush3.bf16.xpose.msra.mxu0 %v2826_v19 }
 0x12f   : > { %2168 = vmatprep.subr.msk.bf16.mxu0 %vm715_vm3, %v2839_v48  ;;  %v1554_v48 = vsel %vm2506_vm2, %v1549_v38, %v1553_v32 }
 0x132   : > { %1976 = vmatpush3.bf16.xpose.msra.mxu1 %v3195_v36  ;;  %v3567_v36 = vld [vmem:[#allocation28_spill] sm:$0xff] }
 0x133   : > { %2136 = vmatprep.subr.msk.bf16.mxu1 %vm715_vm3, %v3031_v61  ;;  %v1898_v61 = vcombine.low %v1544_v34, %v1554_v48 }
 0x136   : > { %2050 = vmatpush3.bf16.xpose.msra.mxu0 %v3564_v45 }
 0x137   : > { %2169 = vmatprep.subr.msk.bf16.mxu0 %vm715_vm3, %v3565_v27 }
 0x13a   : > { %1978 = vmatpush3.bf16.xpose.msra.mxu1 %v3219_v26 }
 0x13b   : > { %2137 = vmatprep.subr.msk.bf16.mxu1 %vm715_vm3, %v3071_v39  ;;  %v1622_v39 = vpop.permute.xlu1 %1621 }
 0x13e   : > { %2052 = vmatpush3.bf16.xpose.msra.mxu0 %v3567_v36 }
 0x13f   : > { %2170 = vmatprep.subr.msk.bf16.mxu0 %vm715_vm3, %v1898_v61 }
 0x142   : > { %1980 = vmatpush3.bf16.xpose.msra.mxu1 %v3237_v30  ;;  %v1700_v30 = vstv %s1695_s8 }
 0x143   : > { %2138 = vmatprep.subr.msk.bf16.mxu1 %vm715_vm3, %v3082_v44  ;;  %v1619_v44 = vrot.slane %v270_v11, 5 }
 0x146   : > { %2054 = vmatpush3.bf16.xpose.msra.mxu0 %v747_v18 }
 0x147   : > { %2171 = vmatprep.subr.msk.bf16.mxu0 %vm715_vm3, %v3054_v9  ;;  %v1900_v9 = vrot.slane %v3287_v25, 9 }
 0x14a   : > { %1982 = vmatpush3.bf16.xpose.msra.mxu1 %v3295_v12 }
 0x14d   : > { %2056 = vmatmul.mubr.msk.bf16.vlgmr.msra.gmra.mrb[0].mxu0 %vm715_vm3, %v3313_v23 }
 0x14e   : > { %2058 = vmatpush3.bf16.xpose.msra.mxu0 %v3106_v51  ;;  %2073 = vmatprep.mubr.msk.bf16.mxu0 %vm715_vm3, %v1622_v39 }
 0x14f   : > { %2172 = vmatprep.subr.msk.bf16.mxu0 %vm715_vm3, %v2922_v35  ;;  %v1616_v35 = vrot.slane %v3290_v46, 5 }
 0x151   : > { %1984 = vmatmul.mubr.msk.bf16.vlgmr.msra.gmra.mrb[0].mxu1 %vm715_vm3, %v1264_v55 }
 0x156   : > { %2060 = vmatpush3.bf16.xpose.msra.mxu0 %v3128_v7 }
 0x157   : > { %2173 = vmatprep.subr.msk.bf16.mxu0 %vm715_vm3, %v2946_v6  ;;  %v1618_v6 = vrot.slane %v1616_v35, 4 }
 0x15e   : > { %2062 = vmatpush3.bf16.xpose.msra.mxu0 %v3149_v22 }
 0x15f   : > { %2174 = vmatprep.subr.msk.bf16.mxu0 %vm715_vm3, %v2973_v33  ;;  %v1617_v33 = vsel %vm2862_vm6, %v1900_v9, %v1616_v35 }
 0x166   : > { %2064 = vmatpush3.bf16.xpose.msra.mxu0 %v3167_v3 }
 0x167   : > { %2175 = vmatprep.subr.msk.bf16.mxu0 %vm715_vm3, %v3010_v21  ;;  %v1620_v21 = vsel %vm2862_vm6, %v1618_v6, %v1619_v44 }
 0x168   : > { %v1901_v51 = vcombine.low %v1617_v33, %v1620_v21 }
 0x16e   : > { %2066 = vmatpush3.bf16.xpose.msra.mxu0 %v3185_v42  ;;  %v1684_v42 = vpop.permute.xlu0 %1683 }
 0x16f   : > { %2176 = vmatprep.subr.msk.bf16.mxu0 %vm715_vm3, %v3047_v62  ;;  %v1196_v62 = vsel %vm715_vm3, %v2895_v47, 0  ;;  %v1689_v47 = vpop.permute.xlu1 %1688 }
 0x176   : > { %2068 = vmatpush3.bf16.xpose.msra.mxu0 %v3206_v40 }
 0x177   : > { %2177 = vmatprep.subr.msk.bf16.mxu0 %vm715_vm3, %v3085_v53 }
 0x17e   : > { %2070 = vmatpush3.bf16.xpose.msra.mxu0 %v3226_v58 }
 0x17f   : > { %2178 = vmatprep.subr.msk.bf16.mxu0 %vm715_vm3, %v1901_v51 }
 0x186   : > { %2072 = vmatpush3.bf16.xpose.msra.mxu0 %v1196_v62 }
 0x18d   : > { %2074 = vmatmul.mubr.msk.bf16.vlgmr.msra.gmra.mrb[0].mxu0 %vm715_vm3, %v1622_v39 }
 0x224   : > { %v1310_v7 = vpop.f32.mrb[0].mxu1 }
 0x225   : > { %v1312_v53 = vpop.f32.mrb[1].mxu1 }
 0x226   : > { %v1314_v22 = vpop.f32.mrb[2].mxu1 }
 0x227   : > { %v1316_v3 = vpop.f32.mrb[3].mxu1 }
 0x260   : > { %v1666_v43 = vpop.f32.mrb[0].mxu0 }
 0x261   : > { %v2075_v40 = vadd.f32 %v1666_v43, %v1310_v7  ;;  %v1668_v26 = vpop.f32.mrb[1].mxu0 }
 0x262   : > { %v2076_v58 = vadd.f32 %v1668_v26, %v1312_v53  ;;  %v1670_v14 = vpop.f32.mrb[2].mxu0 }
 0x263   : > { %v1691_v25 = vadd.f32 %v2075_v40, %v1684_v42  ;;  %v2077_v46 = vadd.f32 %v1670_v14, %v1314_v22  ;;  %v1672_v12 = vpop.f32.mrb[3].mxu0 }
 0x264   : > { %v1692_v49 = vadd.f32 %v2076_v58, %v1684_v42  ;;  %v2078_v16 = vadd.f32 %v1672_v12, %v1316_v3 }
 0x265   : > { %vm1696_vm7 = vcmp.gt.f32.partialorder %v1691_v25, 0.0  ;;  %v1701_v1 = vmul.f32 %v1700_v30, %v1691_v25  ;;  %v1693_v23 = vadd.f32 %v2077_v46, %v1689_v47 }
 0x266   : > { %vm1697_vm8 = vcmp.gt.f32.partialorder %v1692_v49, 0.0  ;;  %v1702_v29 = vmul.f32 %v1700_v30, %v1692_v49  ;;  %v1694_v63 = vadd.f32 %v2078_v16, %v1689_v47 }
 0x267   : > { %v1705_v20 = vsel %vm1696_vm7, %v1691_v25, %v1701_v1  ;;  %vm1698_vm9 = vcmp.gt.f32.partialorder %v1693_v23, 0.0  ;;  %v1703_v0 = vmul.f32 %v1700_v30, %v1693_v23 }
 0x268   : > { %v1706_v55 = vsel %vm1697_vm8, %v1692_v49, %v1702_v29  ;;  %vm1699_vm10 = vcmp.gt.f32.partialorder %v1694_v63, 0.0  ;;  %v1704_v54 = vmul.f32 %v1700_v30, %v1694_v63 }
 0x269   : > { %v1910_v52 = vpack.c.bf16 %v1706_v55, %v1705_v20  ;;  %v1707_v28 = vsel %vm1698_vm9, %v1693_v23, %v1703_v0 }
 0x26a   : > { %v1708_v57 = vsel %vm1699_vm10, %v1694_v63, %v1704_v54 }
 0x26b   : > { %1721 = vst [vmem:[%s205_s12] sm:$0xff] %v1910_v52  ;;  %v1911_v56 = vpack.c.bf16 %v1708_v57, %v1707_v28 }
 0x26d   : > { %1722 = vst [vmem:[%s205_s12 + $0x8] sm:$0xff] %v1911_v56 }
 0x26e   : > { %2291 = shalt.err (!%p2288_p5)
}
 0x26f   : > { %s2292_s30 = scalar_lea.hbm %s3421_s16, 256  ;;  %s2296_s7 = scalar_lea.hbm %s3477_s4, 512 }
 0x270   : > { %p2293_p6 = scmp.ne.s32.totalorder %s3421_s16, %s2292_s30  ;;  %p2297_p10 = scmp.lt.u32.totalorder %s3421_s16, %s3477_s4 }
 0x271   : > { %p2298_p11 = scmp.lt.u32.totalorder %s2296_s7, %s2292_s30  ;;  %p2300_p13 = scmp.lt.u32.totalorder %s2292_s30, %s3421_s16 }
 0x272   : > { %p2294_p7 = pnand %p2293_p6, %p2438_p4 }
 0x273   : > { %p2299_p12 = por %p2298_p11, %p2297_p10 }
 0x274   : > { %p2295_p9 = pneg %p2294_p7 }
 0x275   : > { %p2301_p0 = por %p2300_p13, %p2299_p12 }
 0x277   : > { %p2302_p1 = pnand %p2301_p0, %p2295_p9 }
 0x279   : > { %2305 = shalt.err (!%p2302_p1)
}
 0x27a   : > { %s2368_s10 = smov 128   ;;  %s2369_s11 = smov 8  }
 0x27b   : > { %2180 = dma.vmem_to_hbm [thread:$0]  (%p2438_p4), %s3423_s13, 256, %s3421_s16, %s3427_s20, %s2368_s10, %s2368_s10, %s2369_s11  }
 0x27c PF: > { %p2186_p2 = scmp.ge.s32.totalorder %s2356_s22, 2  ;;  %s1754_s12 = sand.u32 1, %s2336_s17  }
 0x27d   : > { %s1755_s14 = scalar_lea.sflag [#allocation4], %s1754_s12 }
 0x27e   : > { %p2183_p3 = pnand %p2186_p2, %p2445_p8 }
 0x280   : > { %2331 = dma.done.wait (!%p2183_p3), %s1755_s14, 256  }
 0x281   : > { %2333 = vsyncadd (!%p2183_p3), %s1755_s14, 4294967040  ;;  %s18_s22 = sadd.s32 1, %s2356_s22   ;;  %s3569_s17 = smov %s2340_s18 }
 0x282   : > { %p15_p5 = scmp.ge.s32.totalorder %s18_s22, 4   ;;  %s3570_s18 = smov %s2344_s19 }
 0x283   : > { %s3571_s19 = smov %s2451_s29  ;;  %s3572_s20 = smov %s2352_s21 }
 0x284   : > { %s3573_s21 = smov %s3575_s24  ;;  %17 = sbr.rel (!%p15_p5) target bundleno = 6 (0x6), region = 72 }
 0x28b   :  { %1760 = vsyncpa [#allocation4], 1 }
 0x28c   :  { %1762 = vsyncpa [#allocation4 + $0x1], 1 }

</bundles_post_ra>
